<compile_context>
chip_gen: v7x
topology: tpu7x:2x2x1
jax: 0.10.0
libtpu: 0.0.40
codegen_flags: <defaults>
</compile_context>

<pallas_src>
import jax
import jax.numpy as jnp
from jax.experimental import pallas as pl
from jax.experimental.pallas import tpu as pltpu


def _round_up(x, m):
    return (x + m - 1) // m * m


def fold_bn(gamma, beta, mean, var, eps=1e-5):
    scale = gamma / jnp.sqrt(var + eps)
    bias = beta - mean * scale
    return scale, bias


def channel_attention_block(x_nchw, params):
    """Forward pass matching ChannelAttentionBlock (stride=1, Cin != Cout)."""
    B, Cin, H, W = x_nchw.shape
    Cout = params["w1"].shape[-1]
    Cmid = params["wa1"].shape[-1]
    f32 = jnp.float32

    Hp, Wp = H + 2, W + 2
    F = Hp * Wp                              # flattened padded image length
    SHIFT = Wp + 1                           # one-sided halo of a 3x3 conv
    LO = _round_up(F, 128)                   # final-output container (lanes)
    LY = _round_up(LO + 2 * SHIFT, 128)      # conv1-output container (+halo)
    LX = _round_up(LY + 2 * SHIFT, 128)      # input container (+halo)
    X_OFF = 2 * SHIFT                        # image start offset in x_cont
    # slice starts for the 9 taps (same list serves conv1 and conv2)
    starts = tuple(SHIFT + (ty - 1) * Wp + (tx - 1)
                   for ty in range(3) for tx in range(3))

    # ---- host-side param prep: fold BN scale into conv weights -------------
    s1, b1 = fold_bn(*params["bn1"])
    s2, b2 = fold_bn(*params["bn2"])
    ss, bs = fold_bn(*params["bns"])
    # HWIO * per-out-channel scale -> per-tap transposed weights (9, Co, Ci)
    w1t9 = jnp.transpose(params["w1"] * s1[None, None, None, :],
                         (0, 1, 3, 2)).reshape(9, Cout, Cin)
    w2t9 = jnp.transpose(params["w2"] * s2[None, None, None, :],
                         (0, 1, 3, 2)).reshape(9, Cout, Cout)
    wst = (params["ws"] * ss[None, :]).T            # (Cout, Cin) shortcut 1x1
    wa1t = params["wa1"].T                          # (Cmid, Cout)
    wa2t = params["wa2"].T                          # (Cout, Cmid)
    b1c = b1.reshape(Cout, 1).astype(f32)
    b2c = b2.reshape(Cout, 1).astype(f32)
    bsc = bs.reshape(Cout, 1).astype(f32)

    # ---- host-side activation prep: NCHW -> channel-major flat buffer ------
    xp = jnp.pad(x_nchw, ((0, 0), (0, 0), (1, 1), (1, 1))).reshape(B, Cin, F)
    x_cont = jnp.pad(xp, ((0, 0), (0, 0), (X_OFF, LX - X_OFF - F)))

    def interior_mask(length, offset):
        q = jnp.arange(length)
        n = q - offset
        i, j = n // Wp, n % Wp
        m = (n >= 0) & (n < F) & (i >= 1) & (i <= H) & (j >= 1) & (j <= W)
        return m.astype(f32)[None, :]

    m1 = interior_mask(LY, SHIFT)   # valid positions in conv1-output coords
    m2 = interior_mask(LO, 0)       # valid positions in final-output coords
    inv_hw = 1.0 / float(H * W)

    # ------------------------- fused kernel ---------------------------------
    def kernel(x_ref, m1_ref, m2_ref, w1_ref, b1_ref, w2_ref, b2_ref,
               wa1_ref, wa2_ref, ws_ref, bs_ref, out_ref):
        x = x_ref[0]                       # (Cin, LX)  channel-major
        msk1 = m1_ref[...]                 # (1, LY)
        msk2 = m2_ref[...]                 # (1, LO)

        def conv3x3(a, w_ref, out_len):
            # 9 shifted matmuls (static lane offsets), accumulated in f32.
            # Tree accumulation: 3 independent row groups, then combine.
            row_sums = []
            for ty in range(3):
                t0 = 3 * ty
                s0 = starts[t0]
                acc = jnp.dot(w_ref[t0], a[:, s0:s0 + out_len],
                              preferred_element_type=jnp.float32)
                for tx in range(1, 3):
                    s = starts[t0 + tx]
                    acc = acc + jnp.dot(w_ref[t0 + tx], a[:, s:s + out_len],
                                        preferred_element_type=jnp.float32)
                row_sums.append(acc)
            return (row_sums[0] + row_sums[1]) + row_sums[2]

        # conv1 (bn1 scale folded) + bias + relu; mask re-imposes the zero halo
        # so conv2's window reads outside the image stay exact zeros.
        y1 = msk1 * jnp.maximum(conv3x3(x, w1_ref, LY) + b1_ref[...], 0.0)
        # conv2 (bn2 scale folded) + bias.
        out2 = conv3x3(y1, w2_ref, LO) + b2_ref[...]          # (Cout, LO)

        # masked global avg / max pooling over the valid H*W positions.
        avg = jnp.sum(out2 * msk2, axis=1, keepdims=True) * inv_hw
        mx = jnp.max(jnp.where(msk2 > 0.0, out2, -jnp.inf),
                     axis=1, keepdims=True)                   # (Cout, 1)

        # attention MLP, run once on stacked [avg | max] columns.
        col = jax.lax.broadcasted_iota(jnp.int32, (Cout, 2), 1)
        stacked = jnp.where(col == 0, avg, mx)                # (Cout, 2)
        h = jnp.maximum(jnp.dot(wa1_ref[...], stacked,
                                preferred_element_type=jnp.float32), 0.0)
        z = jnp.dot(wa2_ref[...], h, preferred_element_type=jnp.float32)
        gate = jnp.sum(jax.nn.sigmoid(z), axis=1, keepdims=True)   # (Cout, 1)

        # 1x1-conv shortcut (bn scale folded) + bias.
        identity = jnp.dot(ws_ref[...], x[:, X_OFF:X_OFF + LO],
                           preferred_element_type=jnp.float32) + bs_ref[...]

        out_ref[0] = jnp.maximum(out2 * gate + identity, 0.0)

    rep2 = lambda b: (0, 0)
    rep3 = lambda b: (0, 0, 0)
    out_buf = pl.pallas_call(
        kernel,
        out_shape=jax.ShapeDtypeStruct((B, Cout, LO), f32),
        grid_spec=pltpu.PrefetchScalarGridSpec(
            num_scalar_prefetch=0,
            grid=(B,),
            in_specs=[
                pl.BlockSpec((1, Cin, LX), lambda b: (b, 0, 0)),   # x buffer
                pl.BlockSpec((1, LY), rep2),                       # mask1
                pl.BlockSpec((1, LO), rep2),                       # mask2
                pl.BlockSpec((9, Cout, Cin), rep3),                # w1 taps
                pl.BlockSpec((Cout, 1), rep2),                     # bn1 bias
                pl.BlockSpec((9, Cout, Cout), rep3),               # w2 taps
                pl.BlockSpec((Cout, 1), rep2),                     # bn2 bias
                pl.BlockSpec((Cmid, Cout), rep2),                  # att fc1
                pl.BlockSpec((Cout, Cmid), rep2),                  # att fc2
                pl.BlockSpec((Cout, Cin), rep2),                   # shortcut w
                pl.BlockSpec((Cout, 1), rep2),                     # shortcut b
            ],
            out_specs=pl.BlockSpec((1, Cout, LO), lambda b: (b, 0, 0)),
        ),
        compiler_params=pltpu.CompilerParams(
            dimension_semantics=("parallel",)),
    )(x_cont, m1, m2, w1t9, b1c, w2t9, b2c, wa1t, wa2t, wst, bsc)

    # strip halo / padding columns: (B, Cout, LO) -> (B, Cout, H, W)
    out = out_buf[:, :, :F].reshape(B, Cout, Hp, Wp)[:, :, 1:H + 1, 1:W + 1]
    return out


# ----------------------------------------------------------------------------
# Pure-JAX reference (NCHW, eval-mode BN) for correctness check
# ----------------------------------------------------------------------------
def reference(x, params):
    dn = ("NCHW", "HWIO", "NCHW")
    conv = lambda a, w: jax.lax.conv_general_dilated(
        a, w, (1, 1), "SAME", dimension_numbers=dn)

    def fold4(gamma, beta, mean, var, eps=1e-5):
        s = gamma / jnp.sqrt(var + eps)
        return s.reshape(1, -1, 1, 1), (beta - mean * s).reshape(1, -1, 1, 1)

    s1, b1 = fold4(*params["bn1"])
    s2, b2 = fold4(*params["bn2"])
    ss, bs = fold4(*params["bns"])

    y1 = jnp.maximum(conv(x, params["w1"]) * s1 + b1, 0.0)
    y2 = conv(y1, params["w2"]) * s2 + b2
    avg = jnp.mean(y2, axis=(2, 3), keepdims=True)
    mx = jnp.max(y2, axis=(2, 3), keepdims=True)

    def att(v):
        h = jnp.maximum(jnp.einsum("bcij,cm->bmij", v, params["wa1"]), 0.0)
        return jax.nn.sigmoid(jnp.einsum("bmij,mc->bcij", h, params["wa2"]))

    gate = att(avg) + att(mx)
    ident = jnp.einsum("bcij,co->boij", x, params["ws"]) * ss + bs
    return jnp.maximum(y2 * gate + ident, 0.0)


# ----------------------------------------------------------------------------
# Main
# ----------------------------------------------------------------------------
if __name__ == "__main__":
    B, Cin, Cout, H, W = 2, 4, 8, 16, 16
    reduction = max(Cout // 16, 4)              # = 4
    Cmid = Cout // reduction                    # = 2

    key = jax.random.PRNGKey(0)
    ks = jax.random.split(key, 16)
    f32 = jnp.float32

    def bn_params(k):
        k1, k2, k3, k4 = jax.random.split(k, 4)
        gamma = jax.random.uniform(k1, (Cout,), f32, 0.5, 1.5)
        beta = 0.1 * jax.random.normal(k2, (Cout,), f32)
        mean = 0.1 * jax.random.normal(k3, (Cout,), f32)
        var = jax.random.uniform(k4, (Cout,), f32, 0.5, 1.5)
        return (gamma, beta, mean, var)

    params = {
        # conv weights kept in HWIO (equivalent to PyTorch OIHW transposed)
        "w1": 0.1 * jax.random.normal(ks[0], (3, 3, Cin, Cout), f32),
        "w2": 0.1 * jax.random.normal(ks[1], (3, 3, Cout, Cout), f32),
        "wa1": 0.3 * jax.random.normal(ks[2], (Cout, Cmid), f32),
        "wa2": 0.3 * jax.random.normal(ks[3], (Cmid, Cout), f32),
        "ws": 0.2 * jax.random.normal(ks[4], (Cin, Cout), f32),
        "bn1": bn_params(ks[5]),
        "bn2": bn_params(ks[6]),
        "bns": bn_params(ks[7]),
    }

    x = jax.random.normal(ks[8], (B, Cin, H, W), f32)   # NCHW like PyTorch

    out = jax.block_until_ready(channel_attention_block(x, params))
    ref = jax.block_until_ready(reference(x, params))

    assert out.shape == (B, Cout, H, W)
    assert jnp.allclose(out, ref, atol=1e-3, rtol=1e-3), "mismatch vs reference"

    print("KERNEL_OK")
</pallas_src>

<mosaic_0001>
module attributes {stable_mosaic.version = 11 : i64} {
  func.func @kernel(%arg0: i32, %arg1: memref<1x4x640xf32, #tpu.memory_space<vmem>>, %arg2: memref<1x512xf32, #tpu.memory_space<vmem>>, %arg3: memref<1x384xf32, #tpu.memory_space<vmem>>, %arg4: memref<9x8x4xf32, #tpu.memory_space<vmem>>, %arg5: memref<8x1xf32, #tpu.memory_space<vmem>>, %arg6: memref<9x8x8xf32, #tpu.memory_space<vmem>>, %arg7: memref<8x1xf32, #tpu.memory_space<vmem>>, %arg8: memref<2x8xf32, #tpu.memory_space<vmem>>, %arg9: memref<8x2xf32, #tpu.memory_space<vmem>>, %arg10: memref<8x4xf32, #tpu.memory_space<vmem>>, %arg11: memref<8x1xf32, #tpu.memory_space<vmem>>, %arg12: memref<1x8x384xf32, #tpu.memory_space<vmem>>) attributes {dimension_semantics = [#tpu.dimension_semantics<parallel>], iteration_bounds = array<i64: 2>, scalar_prefetch = 0 : i64, scratch_operands = 0 : i64, tpu.core_type = #tpu.core_type<tc>, window_params = [{transform_indices = @transform_0, window_bounds = array<i64: 1, 4, 640>}, {pipeline_mode = #tpu.pipeline_mode<synchronous>, transform_indices = @transform_1, window_bounds = array<i64: 1, 512>}, {pipeline_mode = #tpu.pipeline_mode<synchronous>, transform_indices = @transform_2, window_bounds = array<i64: 1, 384>}, {pipeline_mode = #tpu.pipeline_mode<synchronous>, transform_indices = @transform_3, window_bounds = array<i64: 9, 8, 4>}, {pipeline_mode = #tpu.pipeline_mode<synchronous>, transform_indices = @transform_4, window_bounds = array<i64: 8, 1>}, {pipeline_mode = #tpu.pipeline_mode<synchronous>, transform_indices = @transform_5, window_bounds = array<i64: 9, 8, 8>}, {pipeline_mode = #tpu.pipeline_mode<synchronous>, transform_indices = @transform_6, window_bounds = array<i64: 8, 1>}, {pipeline_mode = #tpu.pipeline_mode<synchronous>, transform_indices = @transform_7, window_bounds = array<i64: 2, 8>}, {pipeline_mode = #tpu.pipeline_mode<synchronous>, transform_indices = @transform_8, window_bounds = array<i64: 8, 2>}, {pipeline_mode = #tpu.pipeline_mode<synchronous>, transform_indices = @transform_9, window_bounds = array<i64: 8, 4>}, {pipeline_mode = #tpu.pipeline_mode<synchronous>, transform_indices = @transform_10, window_bounds = array<i64: 8, 1>}, {transform_indices = @transform_11, window_bounds = array<i64: 1, 8, 384>}]} {
    %c0 = arith.constant 0 : index
    %c0_0 = arith.constant 0 : index
    %c0_1 = arith.constant 0 : index
    %0 = vector.load %arg1[%c0, %c0_0, %c0_1] : memref<1x4x640xf32, #tpu.memory_space<vmem>>, vector<1x4x640xf32>
    %1 = vector.shape_cast %0 : vector<1x4x640xf32> to vector<4x640xf32>
    %c0_2 = arith.constant 0 : index
    %c0_3 = arith.constant 0 : index
    %2 = vector.load %arg2[%c0_2, %c0_3] : memref<1x512xf32, #tpu.memory_space<vmem>>, vector<1x512xf32>
    %c0_4 = arith.constant 0 : index
    %c0_5 = arith.constant 0 : index
    %3 = vector.load %arg3[%c0_4, %c0_5] : memref<1x384xf32, #tpu.memory_space<vmem>>, vector<1x384xf32>
    %c0_6 = arith.constant 0 : index
    %c0_7 = arith.constant 0 : index
    %c0_8 = arith.constant 0 : index
    %4 = vector.load %arg4[%c0_6, %c0_7, %c0_8] : memref<9x8x4xf32, #tpu.memory_space<vmem>>, vector<1x8x4xf32>
    %5 = vector.shape_cast %4 : vector<1x8x4xf32> to vector<8x4xf32>
    %6 = vector.extract_strided_slice %1 {offsets = [0, 0], sizes = [4, 512], strides = [1, 1]} : vector<4x640xf32> to vector<4x512xf32>
    %cst = arith.constant dense<0.000000e+00> : vector<8x512xf32>
    %7 = tpu.matmul %5, %6, %cst {dimension_numbers = #tpu.dot_dimension_numbers<[1], [0], [0], [1], [0, 0, 1, 1], [], []>} : vector<8x4xf32>, vector<4x512xf32>, vector<8x512xf32> -> vector<8x512xf32>
    %c1 = arith.constant 1 : index
    %c0_9 = arith.constant 0 : index
    %c0_10 = arith.constant 0 : index
    %8 = vector.load %arg4[%c1, %c0_9, %c0_10] : memref<9x8x4xf32, #tpu.memory_space<vmem>>, vector<1x8x4xf32>
    %9 = vector.shape_cast %8 : vector<1x8x4xf32> to vector<8x4xf32>
    %10 = vector.extract_strided_slice %1 {offsets = [0, 1], sizes = [4, 512], strides = [1, 1]} : vector<4x640xf32> to vector<4x512xf32>
    %cst_11 = arith.constant dense<0.000000e+00> : vector<8x512xf32>
    %11 = tpu.matmul %9, %10, %cst_11 {dimension_numbers = #tpu.dot_dimension_numbers<[1], [0], [0], [1], [0, 0, 1, 1], [], []>} : vector<8x4xf32>, vector<4x512xf32>, vector<8x512xf32> -> vector<8x512xf32>
    %12 = arith.addf %7, %11 : vector<8x512xf32>
    %c2 = arith.constant 2 : index
    %c0_12 = arith.constant 0 : index
    %c0_13 = arith.constant 0 : index
    %13 = vector.load %arg4[%c2, %c0_12, %c0_13] : memref<9x8x4xf32, #tpu.memory_space<vmem>>, vector<1x8x4xf32>
    %14 = vector.shape_cast %13 : vector<1x8x4xf32> to vector<8x4xf32>
    %15 = vector.extract_strided_slice %1 {offsets = [0, 2], sizes = [4, 512], strides = [1, 1]} : vector<4x640xf32> to vector<4x512xf32>
    %cst_14 = arith.constant dense<0.000000e+00> : vector<8x512xf32>
    %16 = tpu.matmul %14, %15, %cst_14 {dimension_numbers = #tpu.dot_dimension_numbers<[1], [0], [0], [1], [0, 0, 1, 1], [], []>} : vector<8x4xf32>, vector<4x512xf32>, vector<8x512xf32> -> vector<8x512xf32>
    %17 = arith.addf %12, %16 : vector<8x512xf32>
    %c3 = arith.constant 3 : index
    %c0_15 = arith.constant 0 : index
    %c0_16 = arith.constant 0 : index
    %18 = vector.load %arg4[%c3, %c0_15, %c0_16] : memref<9x8x4xf32, #tpu.memory_space<vmem>>, vector<1x8x4xf32>
    %19 = vector.shape_cast %18 : vector<1x8x4xf32> to vector<8x4xf32>
    %20 = vector.extract_strided_slice %1 {offsets = [0, 18], sizes = [4, 512], strides = [1, 1]} : vector<4x640xf32> to vector<4x512xf32>
    %cst_17 = arith.constant dense<0.000000e+00> : vector<8x512xf32>
    %21 = tpu.matmul %19, %20, %cst_17 {dimension_numbers = #tpu.dot_dimension_numbers<[1], [0], [0], [1], [0, 0, 1, 1], [], []>} : vector<8x4xf32>, vector<4x512xf32>, vector<8x512xf32> -> vector<8x512xf32>
    %c4 = arith.constant 4 : index
    %c0_18 = arith.constant 0 : index
    %c0_19 = arith.constant 0 : index
    %22 = vector.load %arg4[%c4, %c0_18, %c0_19] : memref<9x8x4xf32, #tpu.memory_space<vmem>>, vector<1x8x4xf32>
    %23 = vector.shape_cast %22 : vector<1x8x4xf32> to vector<8x4xf32>
    %24 = vector.extract_strided_slice %1 {offsets = [0, 19], sizes = [4, 512], strides = [1, 1]} : vector<4x640xf32> to vector<4x512xf32>
    %cst_20 = arith.constant dense<0.000000e+00> : vector<8x512xf32>
    %25 = tpu.matmul %23, %24, %cst_20 {dimension_numbers = #tpu.dot_dimension_numbers<[1], [0], [0], [1], [0, 0, 1, 1], [], []>} : vector<8x4xf32>, vector<4x512xf32>, vector<8x512xf32> -> vector<8x512xf32>
    %26 = arith.addf %21, %25 : vector<8x512xf32>
    %c5 = arith.constant 5 : index
    %c0_21 = arith.constant 0 : index
    %c0_22 = arith.constant 0 : index
    %27 = vector.load %arg4[%c5, %c0_21, %c0_22] : memref<9x8x4xf32, #tpu.memory_space<vmem>>, vector<1x8x4xf32>
    %28 = vector.shape_cast %27 : vector<1x8x4xf32> to vector<8x4xf32>
    %29 = vector.extract_strided_slice %1 {offsets = [0, 20], sizes = [4, 512], strides = [1, 1]} : vector<4x640xf32> to vector<4x512xf32>
    %cst_23 = arith.constant dense<0.000000e+00> : vector<8x512xf32>
    %30 = tpu.matmul %28, %29, %cst_23 {dimension_numbers = #tpu.dot_dimension_numbers<[1], [0], [0], [1], [0, 0, 1, 1], [], []>} : vector<8x4xf32>, vector<4x512xf32>, vector<8x512xf32> -> vector<8x512xf32>
    %31 = arith.addf %26, %30 : vector<8x512xf32>
    %c6 = arith.constant 6 : index
    %c0_24 = arith.constant 0 : index
    %c0_25 = arith.constant 0 : index
    %32 = vector.load %arg4[%c6, %c0_24, %c0_25] : memref<9x8x4xf32, #tpu.memory_space<vmem>>, vector<1x8x4xf32>
    %33 = vector.shape_cast %32 : vector<1x8x4xf32> to vector<8x4xf32>
    %34 = vector.extract_strided_slice %1 {offsets = [0, 36], sizes = [4, 512], strides = [1, 1]} : vector<4x640xf32> to vector<4x512xf32>
    %cst_26 = arith.constant dense<0.000000e+00> : vector<8x512xf32>
    %35 = tpu.matmul %33, %34, %cst_26 {dimension_numbers = #tpu.dot_dimension_numbers<[1], [0], [0], [1], [0, 0, 1, 1], [], []>} : vector<8x4xf32>, vector<4x512xf32>, vector<8x512xf32> -> vector<8x512xf32>
    %c7 = arith.constant 7 : index
    %c0_27 = arith.constant 0 : index
    %c0_28 = arith.constant 0 : index
    %36 = vector.load %arg4[%c7, %c0_27, %c0_28] : memref<9x8x4xf32, #tpu.memory_space<vmem>>, vector<1x8x4xf32>
    %37 = vector.shape_cast %36 : vector<1x8x4xf32> to vector<8x4xf32>
    %38 = vector.extract_strided_slice %1 {offsets = [0, 37], sizes = [4, 512], strides = [1, 1]} : vector<4x640xf32> to vector<4x512xf32>
    %cst_29 = arith.constant dense<0.000000e+00> : vector<8x512xf32>
    %39 = tpu.matmul %37, %38, %cst_29 {dimension_numbers = #tpu.dot_dimension_numbers<[1], [0], [0], [1], [0, 0, 1, 1], [], []>} : vector<8x4xf32>, vector<4x512xf32>, vector<8x512xf32> -> vector<8x512xf32>
    %40 = arith.addf %35, %39 : vector<8x512xf32>
    %c8 = arith.constant 8 : index
    %c0_30 = arith.constant 0 : index
    %c0_31 = arith.constant 0 : index
    %41 = vector.load %arg4[%c8, %c0_30, %c0_31] : memref<9x8x4xf32, #tpu.memory_space<vmem>>, vector<1x8x4xf32>
    %42 = vector.shape_cast %41 : vector<1x8x4xf32> to vector<8x4xf32>
    %43 = vector.extract_strided_slice %1 {offsets = [0, 38], sizes = [4, 512], strides = [1, 1]} : vector<4x640xf32> to vector<4x512xf32>
    %cst_32 = arith.constant dense<0.000000e+00> : vector<8x512xf32>
    %44 = tpu.matmul %42, %43, %cst_32 {dimension_numbers = #tpu.dot_dimension_numbers<[1], [0], [0], [1], [0, 0, 1, 1], [], []>} : vector<8x4xf32>, vector<4x512xf32>, vector<8x512xf32> -> vector<8x512xf32>
    %45 = arith.addf %40, %44 : vector<8x512xf32>
    %46 = arith.addf %17, %31 : vector<8x512xf32>
    %47 = arith.addf %46, %45 : vector<8x512xf32>
    %c0_33 = arith.constant 0 : index
    %c0_34 = arith.constant 0 : index
    %48 = vector.load %arg5[%c0_33, %c0_34] : memref<8x1xf32, #tpu.memory_space<vmem>>, vector<8x1xf32>
    %49 = vector.broadcast %48 : vector<8x1xf32> to vector<8x512xf32>
    %50 = arith.addf %47, %49 : vector<8x512xf32>
    %cst_35 = arith.constant 0.000000e+00 : f32
    %51 = vector.broadcast %cst_35 : f32 to vector<8x512xf32>
    %52 = arith.maximumf %50, %51 : vector<8x512xf32>
    %53 = vector.broadcast %2 : vector<1x512xf32> to vector<8x512xf32>
    %54 = arith.mulf %53, %52 : vector<8x512xf32>
    %c0_36 = arith.constant 0 : index
    %c0_37 = arith.constant 0 : index
    %c0_38 = arith.constant 0 : index
    %55 = vector.load %arg6[%c0_36, %c0_37, %c0_38] : memref<9x8x8xf32, #tpu.memory_space<vmem>>, vector<1x8x8xf32>
    %56 = vector.shape_cast %55 : vector<1x8x8xf32> to vector<8x8xf32>
    %57 = vector.extract_strided_slice %54 {offsets = [0, 0], sizes = [8, 384], strides = [1, 1]} : vector<8x512xf32> to vector<8x384xf32>
    %cst_39 = arith.constant dense<0.000000e+00> : vector<8x384xf32>
    %58 = tpu.matmul %56, %57, %cst_39 {dimension_numbers = #tpu.dot_dimension_numbers<[1], [0], [0], [1], [0, 0, 1, 1], [], []>} : vector<8x8xf32>, vector<8x384xf32>, vector<8x384xf32> -> vector<8x384xf32>
    %c1_40 = arith.constant 1 : index
    %c0_41 = arith.constant 0 : index
    %c0_42 = arith.constant 0 : index
    %59 = vector.load %arg6[%c1_40, %c0_41, %c0_42] : memref<9x8x8xf32, #tpu.memory_space<vmem>>, vector<1x8x8xf32>
    %60 = vector.shape_cast %59 : vector<1x8x8xf32> to vector<8x8xf32>
    %61 = vector.extract_strided_slice %54 {offsets = [0, 1], sizes = [8, 384], strides = [1, 1]} : vector<8x512xf32> to vector<8x384xf32>
    %cst_43 = arith.constant dense<0.000000e+00> : vector<8x384xf32>
    %62 = tpu.matmul %60, %61, %cst_43 {dimension_numbers = #tpu.dot_dimension_numbers<[1], [0], [0], [1], [0, 0, 1, 1], [], []>} : vector<8x8xf32>, vector<8x384xf32>, vector<8x384xf32> -> vector<8x384xf32>
    %63 = arith.addf %58, %62 : vector<8x384xf32>
    %c2_44 = arith.constant 2 : index
    %c0_45 = arith.constant 0 : index
    %c0_46 = arith.constant 0 : index
    %64 = vector.load %arg6[%c2_44, %c0_45, %c0_46] : memref<9x8x8xf32, #tpu.memory_space<vmem>>, vector<1x8x8xf32>
    %65 = vector.shape_cast %64 : vector<1x8x8xf32> to vector<8x8xf32>
    %66 = vector.extract_strided_slice %54 {offsets = [0, 2], sizes = [8, 384], strides = [1, 1]} : vector<8x512xf32> to vector<8x384xf32>
    %cst_47 = arith.constant dense<0.000000e+00> : vector<8x384xf32>
    %67 = tpu.matmul %65, %66, %cst_47 {dimension_numbers = #tpu.dot_dimension_numbers<[1], [0], [0], [1], [0, 0, 1, 1], [], []>} : vector<8x8xf32>, vector<8x384xf32>, vector<8x384xf32> -> vector<8x384xf32>
    %68 = arith.addf %63, %67 : vector<8x384xf32>
    %c3_48 = arith.constant 3 : index
    %c0_49 = arith.constant 0 : index
    %c0_50 = arith.constant 0 : index
    %69 = vector.load %arg6[%c3_48, %c0_49, %c0_50] : memref<9x8x8xf32, #tpu.memory_space<vmem>>, vector<1x8x8xf32>
    %70 = vector.shape_cast %69 : vector<1x8x8xf32> to vector<8x8xf32>
    %71 = vector.extract_strided_slice %54 {offsets = [0, 18], sizes = [8, 384], strides = [1, 1]} : vector<8x512xf32> to vector<8x384xf32>
    %cst_51 = arith.constant dense<0.000000e+00> : vector<8x384xf32>
    %72 = tpu.matmul %70, %71, %cst_51 {dimension_numbers = #tpu.dot_dimension_numbers<[1], [0], [0], [1], [0, 0, 1, 1], [], []>} : vector<8x8xf32>, vector<8x384xf32>, vector<8x384xf32> -> vector<8x384xf32>
    %c4_52 = arith.constant 4 : index
    %c0_53 = arith.constant 0 : index
    %c0_54 = arith.constant 0 : index
    %73 = vector.load %arg6[%c4_52, %c0_53, %c0_54] : memref<9x8x8xf32, #tpu.memory_space<vmem>>, vector<1x8x8xf32>
    %74 = vector.shape_cast %73 : vector<1x8x8xf32> to vector<8x8xf32>
    %75 = vector.extract_strided_slice %54 {offsets = [0, 19], sizes = [8, 384], strides = [1, 1]} : vector<8x512xf32> to vector<8x384xf32>
    %cst_55 = arith.constant dense<0.000000e+00> : vector<8x384xf32>
    %76 = tpu.matmul %74, %75, %cst_55 {dimension_numbers = #tpu.dot_dimension_numbers<[1], [0], [0], [1], [0, 0, 1, 1], [], []>} : vector<8x8xf32>, vector<8x384xf32>, vector<8x384xf32> -> vector<8x384xf32>
    %77 = arith.addf %72, %76 : vector<8x384xf32>
    %c5_56 = arith.constant 5 : index
    %c0_57 = arith.constant 0 : index
    %c0_58 = arith.constant 0 : index
    %78 = vector.load %arg6[%c5_56, %c0_57, %c0_58] : memref<9x8x8xf32, #tpu.memory_space<vmem>>, vector<1x8x8xf32>
    %79 = vector.shape_cast %78 : vector<1x8x8xf32> to vector<8x8xf32>
    %80 = vector.extract_strided_slice %54 {offsets = [0, 20], sizes = [8, 384], strides = [1, 1]} : vector<8x512xf32> to vector<8x384xf32>
    %cst_59 = arith.constant dense<0.000000e+00> : vector<8x384xf32>
    %81 = tpu.matmul %79, %80, %cst_59 {dimension_numbers = #tpu.dot_dimension_numbers<[1], [0], [0], [1], [0, 0, 1, 1], [], []>} : vector<8x8xf32>, vector<8x384xf32>, vector<8x384xf32> -> vector<8x384xf32>
    %82 = arith.addf %77, %81 : vector<8x384xf32>
    %c6_60 = arith.constant 6 : index
    %c0_61 = arith.constant 0 : index
    %c0_62 = arith.constant 0 : index
    %83 = vector.load %arg6[%c6_60, %c0_61, %c0_62] : memref<9x8x8xf32, #tpu.memory_space<vmem>>, vector<1x8x8xf32>
    %84 = vector.shape_cast %83 : vector<1x8x8xf32> to vector<8x8xf32>
    %85 = vector.extract_strided_slice %54 {offsets = [0, 36], sizes = [8, 384], strides = [1, 1]} : vector<8x512xf32> to vector<8x384xf32>
    %cst_63 = arith.constant dense<0.000000e+00> : vector<8x384xf32>
    %86 = tpu.matmul %84, %85, %cst_63 {dimension_numbers = #tpu.dot_dimension_numbers<[1], [0], [0], [1], [0, 0, 1, 1], [], []>} : vector<8x8xf32>, vector<8x384xf32>, vector<8x384xf32> -> vector<8x384xf32>
    %c7_64 = arith.constant 7 : index
    %c0_65 = arith.constant 0 : index
    %c0_66 = arith.constant 0 : index
    %87 = vector.load %arg6[%c7_64, %c0_65, %c0_66] : memref<9x8x8xf32, #tpu.memory_space<vmem>>, vector<1x8x8xf32>
    %88 = vector.shape_cast %87 : vector<1x8x8xf32> to vector<8x8xf32>
    %89 = vector.extract_strided_slice %54 {offsets = [0, 37], sizes = [8, 384], strides = [1, 1]} : vector<8x512xf32> to vector<8x384xf32>
    %cst_67 = arith.constant dense<0.000000e+00> : vector<8x384xf32>
    %90 = tpu.matmul %88, %89, %cst_67 {dimension_numbers = #tpu.dot_dimension_numbers<[1], [0], [0], [1], [0, 0, 1, 1], [], []>} : vector<8x8xf32>, vector<8x384xf32>, vector<8x384xf32> -> vector<8x384xf32>
    %91 = arith.addf %86, %90 : vector<8x384xf32>
    %c8_68 = arith.constant 8 : index
    %c0_69 = arith.constant 0 : index
    %c0_70 = arith.constant 0 : index
    %92 = vector.load %arg6[%c8_68, %c0_69, %c0_70] : memref<9x8x8xf32, #tpu.memory_space<vmem>>, vector<1x8x8xf32>
    %93 = vector.shape_cast %92 : vector<1x8x8xf32> to vector<8x8xf32>
    %94 = vector.extract_strided_slice %54 {offsets = [0, 38], sizes = [8, 384], strides = [1, 1]} : vector<8x512xf32> to vector<8x384xf32>
    %cst_71 = arith.constant dense<0.000000e+00> : vector<8x384xf32>
    %95 = tpu.matmul %93, %94, %cst_71 {dimension_numbers = #tpu.dot_dimension_numbers<[1], [0], [0], [1], [0, 0, 1, 1], [], []>} : vector<8x8xf32>, vector<8x384xf32>, vector<8x384xf32> -> vector<8x384xf32>
    %96 = arith.addf %91, %95 : vector<8x384xf32>
    %97 = arith.addf %68, %82 : vector<8x384xf32>
    %98 = arith.addf %97, %96 : vector<8x384xf32>
    %c0_72 = arith.constant 0 : index
    %c0_73 = arith.constant 0 : index
    %99 = vector.load %arg7[%c0_72, %c0_73] : memref<8x1xf32, #tpu.memory_space<vmem>>, vector<8x1xf32>
    %100 = vector.broadcast %99 : vector<8x1xf32> to vector<8x384xf32>
    %101 = arith.addf %98, %100 : vector<8x384xf32>
    %102 = vector.broadcast %3 : vector<1x384xf32> to vector<8x384xf32>
    %103 = arith.mulf %101, %102 : vector<8x384xf32>
    %cst_74 = arith.constant dense<0.000000e+00> : vector<8xf32>
    %104 = vector.multi_reduction <add>, %103, %cst_74 [1] : vector<8x384xf32> to vector<8xf32>
    %105 = vector.shape_cast %104 : vector<8xf32> to vector<8x1xf32>
    %cst_75 = arith.constant 3.906250e-03 : f32
    %106 = vector.broadcast %cst_75 : f32 to vector<8x1xf32>
    %107 = arith.mulf %105, %106 : vector<8x1xf32>
    %cst_76 = arith.constant 0.000000e+00 : f32
    %108 = vector.broadcast %cst_76 : f32 to vector<1x384xf32>
    %109 = arith.cmpf ogt, %3, %108 : vector<1x384xf32>
    %cst_77 = arith.constant 0xFF800000 : f32
    %110 = vector.shape_cast %109 : vector<1x384xi1> to vector<1x384xi1>
    %111 = vector.broadcast %110 : vector<1x384xi1> to vector<8x384xi1>
    %112 = vector.broadcast %cst_77 : f32 to vector<8x384xf32>
    %113 = arith.select %111, %101, %112 : vector<8x384xi1>, vector<8x384xf32>
    %cst_78 = arith.constant dense<0xFF800000> : vector<8xf32>
    %114 = vector.multi_reduction <maximumf>, %113, %cst_78 [1] : vector<8x384xf32> to vector<8xf32>
    %115 = vector.shape_cast %114 : vector<8xf32> to vector<8x1xf32>
    %116 = tpu.iota {dimensions = array<i32: 1>} : vector<8x2xi32>
    %c0_i32 = arith.constant 0 : i32
    %117 = vector.broadcast %c0_i32 : i32 to vector<8x2xi32>
    %118 = arith.cmpi eq, %116, %117 : vector<8x2xi32>
    %119 = vector.shape_cast %107 : vector<8x1xf32> to vector<8x1xf32>
    %120 = vector.broadcast %119 : vector<8x1xf32> to vector<8x2xf32>
    %121 = vector.shape_cast %115 : vector<8x1xf32> to vector<8x1xf32>
    %122 = vector.broadcast %121 : vector<8x1xf32> to vector<8x2xf32>
    %123 = arith.select %118, %120, %122 : vector<8x2xi1>, vector<8x2xf32>
    %c0_79 = arith.constant 0 : index
    %c0_80 = arith.constant 0 : index
    %124 = vector.load %arg8[%c0_79, %c0_80] : memref<2x8xf32, #tpu.memory_space<vmem>>, vector<2x8xf32>
    %cst_81 = arith.constant dense<0.000000e+00> : vector<2x2xf32>
    %125 = tpu.matmul %124, %123, %cst_81 {dimension_numbers = #tpu.dot_dimension_numbers<[1], [0], [0], [1], [0, 0, 1, 1], [], []>} : vector<2x8xf32>, vector<8x2xf32>, vector<2x2xf32> -> vector<2x2xf32>
    %cst_82 = arith.constant 0.000000e+00 : f32
    %126 = vector.broadcast %cst_82 : f32 to vector<2x2xf32>
    %127 = arith.maximumf %125, %126 : vector<2x2xf32>
    %c0_83 = arith.constant 0 : index
    %c0_84 = arith.constant 0 : index
    %128 = vector.load %arg9[%c0_83, %c0_84] : memref<8x2xf32, #tpu.memory_space<vmem>>, vector<8x2xf32>
    %cst_85 = arith.constant dense<0.000000e+00> : vector<8x2xf32>
    %129 = tpu.matmul %128, %127, %cst_85 {dimension_numbers = #tpu.dot_dimension_numbers<[1], [0], [0], [1], [0, 0, 1, 1], [], []>} : vector<8x2xf32>, vector<2x2xf32>, vector<8x2xf32> -> vector<8x2xf32>
    %130 = arith.negf %129 : vector<8x2xf32>
    %131 = math.exp %130 : vector<8x2xf32>
    %cst_86 = arith.constant 1.000000e+00 : f32
    %132 = vector.broadcast %cst_86 : f32 to vector<8x2xf32>
    %133 = arith.addf %132, %131 : vector<8x2xf32>
    %134 = arith.divf %132, %133 : vector<8x2xf32>
    %cst_87 = arith.constant dense<0.000000e+00> : vector<8xf32>
    %135 = vector.multi_reduction <add>, %134, %cst_87 [1] : vector<8x2xf32> to vector<8xf32>
    %136 = vector.shape_cast %135 : vector<8xf32> to vector<8x1xf32>
    %c0_88 = arith.constant 0 : index
    %c0_89 = arith.constant 0 : index
    %137 = vector.load %arg10[%c0_88, %c0_89] : memref<8x4xf32, #tpu.memory_space<vmem>>, vector<8x4xf32>
    %138 = vector.extract_strided_slice %1 {offsets = [0, 38], sizes = [4, 384], strides = [1, 1]} : vector<4x640xf32> to vector<4x384xf32>
    %cst_90 = arith.constant dense<0.000000e+00> : vector<8x384xf32>
    %139 = tpu.matmul %137, %138, %cst_90 {dimension_numbers = #tpu.dot_dimension_numbers<[1], [0], [0], [1], [0, 0, 1, 1], [], []>} : vector<8x4xf32>, vector<4x384xf32>, vector<8x384xf32> -> vector<8x384xf32>
    %c0_91 = arith.constant 0 : index
    %c0_92 = arith.constant 0 : index
    %140 = vector.load %arg11[%c0_91, %c0_92] : memref<8x1xf32, #tpu.memory_space<vmem>>, vector<8x1xf32>
    %141 = vector.broadcast %140 : vector<8x1xf32> to vector<8x384xf32>
    %142 = arith.addf %139, %141 : vector<8x384xf32>
    %143 = vector.broadcast %136 : vector<8x1xf32> to vector<8x384xf32>
    %144 = arith.mulf %101, %143 : vector<8x384xf32>
    %145 = arith.addf %144, %142 : vector<8x384xf32>
    %cst_93 = arith.constant 0.000000e+00 : f32
    %146 = vector.broadcast %cst_93 : f32 to vector<8x384xf32>
    %147 = arith.maximumf %145, %146 : vector<8x384xf32>
    %c0_94 = arith.constant 0 : index
    %c0_95 = arith.constant 0 : index
    %c0_96 = arith.constant 0 : index
    %148 = vector.load %arg12[%c0_94, %c0_95, %c0_96] : memref<1x8x384xf32, #tpu.memory_space<vmem>>, vector<1x8x384xf32>
    %149 = vector.shape_cast %148 : vector<1x8x384xf32> to vector<8x384xf32>
    %150 = vector.shape_cast %147 : vector<8x384xf32> to vector<1x8x384xf32>
    tpu.vector_store %arg12[%c0_94, %c0_95, %c0_96], %150 {strides = array<i32>} : memref<1x8x384xf32, #tpu.memory_space<vmem>>, vector<1x8x384xf32>,
    return
  }
  func.func @transform_0(%arg0: i32) -> (i32, i32, i32) {
    %c0_i32 = arith.constant 0 : i32
    %c0_i32_0 = arith.constant 0 : i32
    %c0_i32_1 = arith.constant 0 : i32
    return %arg0, %c0_i32, %c0_i32_0 : i32, i32, i32
  }
  func.func @transform_1(%arg0: i32) -> (i32, i32) {
    %c0_i32 = arith.constant 0 : i32
    %c0_i32_0 = arith.constant 0 : i32
    %c0_i32_1 = arith.constant 0 : i32
    return %c0_i32, %c0_i32_0 : i32, i32
  }
  func.func @transform_2(%arg0: i32) -> (i32, i32) {
    %c0_i32 = arith.constant 0 : i32
    %c0_i32_0 = arith.constant 0 : i32
    %c0_i32_1 = arith.constant 0 : i32
    return %c0_i32, %c0_i32_0 : i32, i32
  }
  func.func @transform_3(%arg0: i32) -> (i32, i32, i32) {
    %c0_i32 = arith.constant 0 : i32
    %c0_i32_0 = arith.constant 0 : i32
    %c0_i32_1 = arith.constant 0 : i32
    %c0_i32_2 = arith.constant 0 : i32
    return %c0_i32, %c0_i32_0, %c0_i32_1 : i32, i32, i32
  }
  func.func @transform_4(%arg0: i32) -> (i32, i32) {
    %c0_i32 = arith.constant 0 : i32
    %c0_i32_0 = arith.constant 0 : i32
    %c0_i32_1 = arith.constant 0 : i32
    return %c0_i32, %c0_i32_0 : i32, i32
  }
  func.func @transform_5(%arg0: i32) -> (i32, i32, i32) {
    %c0_i32 = arith.constant 0 : i32
    %c0_i32_0 = arith.constant 0 : i32
    %c0_i32_1 = arith.constant 0 : i32
    %c0_i32_2 = arith.constant 0 : i32
    return %c0_i32, %c0_i32_0, %c0_i32_1 : i32, i32, i32
  }
  func.func @transform_6(%arg0: i32) -> (i32, i32) {
    %c0_i32 = arith.constant 0 : i32
    %c0_i32_0 = arith.constant 0 : i32
    %c0_i32_1 = arith.constant 0 : i32
    return %c0_i32, %c0_i32_0 : i32, i32
  }
  func.func @transform_7(%arg0: i32) -> (i32, i32) {
    %c0_i32 = arith.constant 0 : i32
    %c0_i32_0 = arith.constant 0 : i32
    %c0_i32_1 = arith.constant 0 : i32
    return %c0_i32, %c0_i32_0 : i32, i32
  }
  func.func @transform_8(%arg0: i32) -> (i32, i32) {
    %c0_i32 = arith.constant 0 : i32
    %c0_i32_0 = arith.constant 0 : i32
    %c0_i32_1 = arith.constant 0 : i32
    return %c0_i32, %c0_i32_0 : i32, i32
  }
  func.func @transform_9(%arg0: i32) -> (i32, i32) {
    %c0_i32 = arith.constant 0 : i32
    %c0_i32_0 = arith.constant 0 : i32
    %c0_i32_1 = arith.constant 0 : i32
    return %c0_i32, %c0_i32_0 : i32, i32
  }
  func.func @transform_10(%arg0: i32) -> (i32, i32) {
    %c0_i32 = arith.constant 0 : i32
    %c0_i32_0 = arith.constant 0 : i32
    %c0_i32_1 = arith.constant 0 : i32
    return %c0_i32, %c0_i32_0 : i32, i32
  }
  func.func @transform_11(%arg0: i32) -> (i32, i32, i32) {
    %c0_i32 = arith.constant 0 : i32
    %c0_i32_0 = arith.constant 0 : i32
    %c0_i32_1 = arith.constant 0 : i32
    return %arg0, %c0_i32, %c0_i32_0 : i32, i32, i32
  }
}

</mosaic_0001>

<bundles_post_ra>
// kernel: tpu_custom_call.1
= control target key start
LH: loop header
LB: loop body
LE: loop exit
PB: predicated region body
PF: predicated region fallthrough
CT: control target
= control target key end

     0   :  { %16 = vsyncpa [#allocation3], 0  ;;  %s4870_s0 = inlined_call_operand.vmem [shape: f32[2,4,640], index: 0, kind: input, shape index: {}]   ;;  %s4871_s1 = inlined_call_operand.vmem [shape: f32[1,512], index: 1, kind: input, shape index: {}]   ;;  %s4872_s2 = inlined_call_operand.vmem [shape: f32[1,384], index: 2, kind: input, shape index: {}]   ;;  %s4873_s3 = inlined_call_operand.vmem [shape: f32[9,8,4], index: 3, kind: input, shape index: {}]   ;;  %s4874_s4 = inlined_call_operand.vmem [shape: f32[8,1], index: 4, kind: input, shape index: {}]   ;;  %s4875_s5 = inlined_call_operand.vmem [shape: f32[9,8,8], index: 5, kind: input, shape index: {}]   ;;  %s4876_s6 = inlined_call_operand.vmem [shape: f32[8,1], index: 6, kind: input, shape index: {}]   ;;  %s4877_s7 = inlined_call_operand.vmem [shape: f32[2,8], index: 7, kind: input, shape index: {}]   ;;  %s4878_s8 = inlined_call_operand.vmem [shape: f32[8,2], index: 8, kind: input, shape index: {}]   ;;  %s4879_s9 = inlined_call_operand.vmem [shape: f32[8,4], index: 9, kind: input, shape index: {}]   ;;  %s4880_s10 = inlined_call_operand.vmem [shape: f32[8,1], index: 10, kind: input, shape index: {}]   ;;  %s4881_s11 = inlined_call_operand.hbm [shape: f32[2,8,384], index: 11, kind: output, shape index: {}]  }
   0x1   :  { %18 = vsyncpa [#allocation3 + $0x1], 0  ;;  %s4310_s17 = smov 0   ;;  %s4312_s18 = smov 0  }
   0x2   :  { %s4314_s19 = smov 0   ;;  %s4316_s20 = smov 0  }
   0x3 LB: > { %s4331_s21 = sadd.s32 4294967295, %s4236_s20   ;;  %s3876_s22 = sadd.s32 4294967294, %s4236_s20   ;;  %s4236_s20 = sphi %s4316_s20, %s4893_s20   ;;  %s4232_s19 = sphi %s4314_s19, %s4892_s19   ;;  %s4228_s18 = sphi %s4312_s18, %s4891_s18   ;;  %s4224_s17 = sphi %s4310_s17, %s4890_s17  }
   0x4   : > { %s4335_s23 = sadd.s32 1, %s4236_s20   ;;  %s267_s24 = sadd.s32 1, %s4232_s19 }
   0x5   : > { %s264_s25 = ssub.s32 %s4236_s20, %s4335_s23  ;;  %p277_p0 = scmp.ne.s32.totalorder %s4232_s19, %s4228_s18 }
   0x6   : > { %p265_p1 = scmp.eq.s32.totalorder %s264_s25, 0  ;;  %p278_p2 = scmp.eq.s32.totalorder %s4331_s21, 1 }
   0x7   : > { %p283_p3 = scmp.ne.s32.totalorder %s4228_s18, %s4224_s17  ;;  %p284_p4 = scmp.eq.s32.totalorder %s3876_s22, 1 }
   0x8   : > { %s4346_s26 = scalar_select %p265_p1, %s4232_s19, %s267_s24  }
   0x9   : > { %p4348_p5 = por %p278_p2, %p277_p0  ;;  %p4352_p6 = por %p284_p4, %p283_p3 }
   0xa   : > { %p3879_p7 = scmp.ge.s32.totalorder %s4236_s20, 1  ;;  %p340_p8 = scmp.lt.s32.totalorder %s4236_s20, 3 }
   0xc   : > { %p341_p9 = pnand %p3879_p7, %p340_p8 }
   0xd   : > { %p380_p10 = scmp.lt.s32.totalorder (!%p341_p9), %s4331_s21, 1  ;;  %v4238_v0 = vmov (!%p341_p9), 0.0   ;;  %s4239_s15 = smov (!%p341_p9), 127   ;;  %v4246_v6 = vmov (!%p341_p9), 0   ;;  %v1931_v7 = vld [vmem:[%s4874_s4] sm:$0xff] (!%p341_p9)  ;;  %vm408_vm0 = vcmask (!%p341_p9), 1039360  }
   0xe   : > { %344 = sbr.rel (%p341_p9) target bundleno = 1606 (0x646), region = 64  ;;  %561 = vmatprep.mubr.f32.mxu1 (!%p341_p9), %v4238_v0  ;;  %490 = vmatprep.mubr.f32.mxu0 (!%p341_p9), %v4238_v0  ;;  %s4240_s16 = smov (!%p341_p9), 126   ;;  %vm417_vm1 = vcmask (!%p341_p9), 1043456   ;;  %v3881_v14 = vld [vmem:[%s4873_s3 + $0x8] sm:$0xff] (!%p341_p9)  ;;  %vm413_vm2 = vcmask (!%p341_p9), 31744   ;;  %vm733_vm3 = vcmask (!%p341_p9), 1031168  }
   0xf   : > { %s4241_s22 = smov (!%p341_p9), 109   ;;  %s4242_s24 = smov (!%p341_p9), 110   ;;  %4166 = vset.pattern.permute.xlu0 (!%p341_p9), %v4246_v6  ;;  %4167 = vset.pattern.permute.xlu1 (!%p341_p9), %v4246_v6  ;;  %v390_v22 = vld [vmem:[%s4873_s3] sm:$0xff] (!%p341_p9)  ;;  %vm909_vm4 = vcmask (!%p341_p9), 891904   ;;  %v3894_v31 = vld [vmem:[%s4873_s3 + $0x10] sm:$0xff] (!%p341_p9)  ;;  %vm1077_vm5 = vcmask (!%p341_p9), 900096  }
  0x10   : > { %s4243_s25 = smov (!%p341_p9), 108   ;;  %s4247_s12 = smov (!%p341_p9), 90   ;;  %v3902_v39 = vld [vmem:[%s4873_s3 + $0x20] sm:$0xff] (!%p341_p9)  ;;  %vm1247_vm6 = vcmask (!%p341_p9), 883712   ;;  %v3901_v48 = vld [vmem:[%s4873_s3 + $0x18] sm:$0xff] (!%p341_p9)  ;;  %v3915_v58 = vld [vmem:[%s4873_s3 + $0x28] sm:$0xff] (!%p341_p9) }
  0x11   : > { %vm1423_vm7 = vcmask (!%p341_p9), 744448   ;;  %vm1591_vm8 = vcmask (!%p341_p9), 752640   ;;  %vm1761_vm9 = vcmask (!%p341_p9), 736256   ;;  %vm4248_vm10 = vmmov (!%p341_p9), 0   ;;  %s4888_s13 = smov (!%p341_p9), 91  }
  0x12   : > { %vm1991_vm11 = vcmask (!%p341_p9), 64512  }
  0x15   : > { %s381_s29 = scalar_select %p380_p10, %s4331_s21, 1 }
  0x17   : > { %s4114_s30 = smul.u32 20, %s381_s29  ;;  %s4884_s29 = smov 91  }
  0x19   : > { %s384_s14 = scalar_lea.vmem %s4870_s0, %s4114_s30  ;;  %s4882_s30 = smov 92  }
  0x1a   : > { %v4365_v1 = vld [vmem:[%s384_s14 + $0x8] sm:$0xff]  ;;  %v4367_v2 = vld [vmem:[%s384_s14] sm:$0xff]  ;;  %v387_v4 = vld [vmem:[%s384_s14 + $0x10] sm:$0xf]  ;;  %s4889_s14 = smov 92  }
  0x1b   : > { %402 = vrot.lane.b32.xlu0 %v4365_v1, %s4239_s15  ;;  %398 = vrot.lane.b32.xlu1 %v4367_v2, %s4239_s15  ;;  %v4375_v3 = vcombine.high %v4365_v1, %v4365_v1  ;;  %v4382_v5 = vcombine.high %v4367_v2, %v4367_v2 }
  0x1f   : > { %406 = vrot.lane.b32.xlu0 %v387_v4, %s4239_s15  ;;  %404 = vrot.lane.b32.xlu1 %v4375_v3, %s4239_s15 }
  0x23   : > { %725 = vrot.lane.b32.xlu1 %v4382_v5, %s4240_s16  ;;  %400 = vrot.lane.b32.xlu0 %v4382_v5, %s4239_s15 }
  0x27   : > { %723 = vrot.lane.b32.xlu1 %v4367_v2, %s4240_s16  ;;  %727 = vrot.lane.b32.xlu0 %v4365_v1, %s4240_s16 }
  0x2b   : > { %731 = vrot.lane.b32.xlu1 %v387_v4, %s4240_s16  ;;  %729 = vrot.lane.b32.xlu0 %v4375_v3, %s4240_s16 }
  0x2f   : > { %903 = vrot.lane.b32.xlu1 %v4365_v1, %s4241_s22  ;;  %901 = vrot.lane.b32.xlu0 %v4382_v5, %s4241_s22 }
  0x33   : > { %905 = vrot.lane.b32.xlu1 %v4375_v3, %s4241_s22  ;;  %899 = vrot.lane.b32.xlu0 %v4367_v2, %s4241_s22 }
  0x37   : > { %1069 = vrot.lane.b32.xlu1 %v4382_v5, %s4242_s24  ;;  %907 = vrot.lane.b32.xlu0 %v387_v4, %s4241_s22 }
  0x3b   : > { %1067 = vrot.lane.b32.xlu1 %v4367_v2, %s4242_s24  ;;  %1071 = vrot.lane.b32.xlu0 %v4365_v1, %s4242_s24 }
  0x3f   : > { %1075 = vrot.lane.b32.xlu1 %v387_v4, %s4242_s24  ;;  %1073 = vrot.lane.b32.xlu0 %v4375_v3, %s4242_s24 }
  0x43   : > { %1241 = vrot.lane.b32.xlu1 %v4365_v1, %s4243_s25  ;;  %1239 = vrot.lane.b32.xlu0 %v4382_v5, %s4243_s25 }
  0x47   : > { %1243 = vrot.lane.b32.xlu1 %v4375_v3, %s4243_s25  ;;  %1237 = vrot.lane.b32.xlu0 %v4367_v2, %s4243_s25 }
  0x4b   : > { %1415 = vrot.lane.b32.xlu1 %v4382_v5, %s4884_s29  ;;  %1245 = vrot.lane.b32.xlu0 %v387_v4, %s4243_s25 }
  0x4f   : > { %1413 = vrot.lane.b32.xlu1 %v4367_v2, %s4884_s29  ;;  %1417 = vrot.lane.b32.xlu0 %v4365_v1, %s4884_s29 }
  0x53   : > { %1421 = vrot.lane.b32.xlu1 %v387_v4, %s4884_s29  ;;  %1419 = vrot.lane.b32.xlu0 %v4375_v3, %s4884_s29 }
  0x57   : > { %1585 = vrot.lane.b32.xlu1 %v4365_v1, %s4882_s30  ;;  %1583 = vrot.lane.b32.xlu0 %v4382_v5, %s4882_s30 }
  0x5b   : > { %1587 = vrot.lane.b32.xlu1 %v4375_v3, %s4882_s30  ;;  %1581 = vrot.lane.b32.xlu0 %v4367_v2, %s4882_s30 }
  0x5f   : > { %1753 = vrot.lane.b32.xlu1 %v4382_v5, %s4247_s12  ;;  %1589 = vrot.lane.b32.xlu0 %v387_v4, %s4882_s30 }
  0x63   : > { %1751 = vrot.lane.b32.xlu1 %v4367_v2, %s4247_s12  ;;  %1755 = vrot.lane.b32.xlu0 %v4365_v1, %s4247_s12 }
  0x67   : > { %1759 = vrot.lane.b32.xlu1 %v387_v4, %s4247_s12  ;;  %1757 = vrot.lane.b32.xlu0 %v4375_v3, %s4247_s12 }
  0x6b   : > { %1934 = vperm.xlu0 %4166, %v1931_v7  }
  0x8d   : > { %v403_v8 = vpop.permute.xlu0 %402  ;;  %v399_v9 = vpop.permute.xlu1 %398 }
  0x91   : > { %v407_v10 = vpop.permute.xlu0 %406  ;;  %v405_v11 = vpop.permute.xlu1 %404 }
  0x92   : > { %v412_v12 = vsel %vm408_vm0, %v405_v11, %v407_v10  ;;  %v411_v13 = vsel %vm408_vm0, %v403_v8, %v405_v11 }
  0x93   : > { %3885 = vmatprep.subr.msk.mxu1 %vm417_vm1, %v412_v12 }
  0x94   : > { %3886 = vmatpush1.msk.msra.mxu1 %vm417_vm1, %v411_v13  ;;  %v3922_v13 = vld [vmem:[%s4873_s3 + $0x30] sm:$0xff] }
  0x95   : > { %v726_v15 = vpop.permute.xlu1 %725  ;;  %v401_v16 = vpop.permute.xlu0 %400  ;;  %3887 = vmatmul.mubr.msk.f32.vlgmr.msra.gmra.mrb[0].mxu1 %vm413_vm2, %v3881_v14  ;;  %3891 = vmatprep.subr.msk.mxu1 %vm417_vm1, %v4375_v3 }
  0x96   : > { %v410_v17 = vsel %vm408_vm0, %v401_v16, %v403_v8  ;;  %v409_v18 = vsel %vm408_vm0, %v399_v9, %v401_v16  ;;  %3892 = vmatpush1.msk.msra.mxu1 %vm417_vm1, %v4365_v1  ;;  %714 = vmatprep.mubr.f32.mxu1 %v4238_v0 }
  0x97   : > { %3882 = vmatprep.subr.msk.mxu0 %vm417_vm1, %v410_v17 }
  0x98   : > { %3883 = vmatpush1.msk.msra.mxu0 %vm417_vm1, %v409_v18 }
  0x99   : > { %v724_v19 = vpop.permute.xlu1 %723  ;;  %3884 = vmatmul.mubr.msk.f32.vlgmr.msra.gmra.mrb[0].mxu0 %vm413_vm2, %v3881_v14  ;;  %3888 = vmatprep.subr.msk.mxu0 %vm417_vm1, %v4382_v5  ;;  %v728_v20 = vpop.permute.xlu0 %727  ;;  %v3923_v5 = vld [vmem:[%s4873_s3 + $0x38] sm:$0xff] }
  0x9a   : > { %v735_v21 = vsel %vm733_vm3, %v726_v15, %v728_v20  ;;  %3889 = vmatpush1.msk.msra.mxu0 %vm417_vm1, %v4367_v2  ;;  %643 = vmatprep.mubr.f32.mxu0 %v4238_v0  ;;  %v734_v27 = vsel %vm733_vm3, %v724_v19, %v726_v15 }
  0x9b   : > { %3895 = vmatprep.subr.msk.mxu0 %vm417_vm1, %v735_v21 }
  0x9d   : > { %v732_v23 = vpop.permute.xlu1 %731  ;;  %v730_v24 = vpop.permute.xlu0 %729  ;;  %3893 = vmatmul.mubr.msk.f32.vlgmr.msra.gmra.mrb[0].mxu1 %vm413_vm2, %v390_v22 }
  0x9e   : > { %v736_v25 = vsel %vm733_vm3, %v728_v20, %v730_v24  ;;  %v737_v26 = vsel %vm733_vm3, %v730_v24, %v732_v23  ;;  %884 = vmatprep.mubr.f32.mxu1 %v4238_v0 }
  0x9f   : > { %3898 = vmatprep.subr.msk.mxu1 %vm417_vm1, %v737_v26 }
  0xa0   : > { %3899 = vmatpush1.msk.msra.mxu1 %vm417_vm1, %v736_v25 }
  0xa1   : > { %v904_v28 = vpop.permute.xlu1 %903  ;;  %3890 = vmatmul.mubr.msk.f32.vlgmr.msra.gmra.mrb[0].mxu0 %vm413_vm2, %v390_v22  ;;  %v902_v29 = vpop.permute.xlu0 %901  ;;  %v3936_v22 = vld [vmem:[%s4873_s3 + $0x40] sm:$0xff] }
  0xa2   : > { %3896 = vmatpush1.msk.msra.mxu0 %vm417_vm1, %v734_v27  ;;  %v911_v30 = vsel %vm909_vm4, %v902_v29, %v904_v28  ;;  %813 = vmatprep.mubr.f32.mxu0 %v4238_v0  ;;  %v1946_v27 = vlaneseq }
  0xa3   : > { %3903 = vmatprep.subr.msk.mxu0 %vm417_vm1, %v911_v30  ;;  %v388_v30 = vld [vmem:[%s4871_s1] sm:$0xf] }
  0xa5   : > { %v906_v32 = vpop.permute.xlu1 %905  ;;  %v900_v33 = vpop.permute.xlu0 %899  ;;  %3900 = vmatmul.mubr.msk.f32.vlgmr.msra.gmra.mrb[0].mxu1 %vm413_vm2, %v3894_v31 }
  0xa6   : > { %1060 = vmatprep.mubr.f32.mxu1 %v4238_v0  ;;  %v910_v34 = vsel %vm909_vm4, %v900_v33, %v902_v29  ;;  %v912_v38 = vsel %vm909_vm4, %v904_v28, %v906_v32  ;;  %v1947_v28 = vshrl.u32 %v1946_v27, 7 }
  0xa8   : > { %v4599_v29 = vsub.s32 0, %v1947_v28 }
  0xa9   : > { %v1070_v35 = vpop.permute.xlu1 %1069  ;;  %3897 = vmatmul.mubr.msk.f32.vlgmr.msra.gmra.mrb[0].mxu0 %vm413_vm2, %v3894_v31  ;;  %v908_v36 = vpop.permute.xlu0 %907 }
  0xaa   : > { %3904 = vmatpush1.msk.msra.mxu0 %vm417_vm1, %v910_v34  ;;  %v913_v37 = vsel %vm909_vm4, %v906_v32, %v908_v36  ;;  %989 = vmatprep.mubr.f32.mxu0 %v4238_v0  ;;  %v4604_v32 = vsub.s32 1, %v1947_v28  ;;  %v1949_v34 = vrot.slane %v388_v30, %v4599_v29 }
  0xab   : > { %3906 = vmatprep.subr.msk.mxu1 %vm417_vm1, %v913_v37  ;;  %v4607_v37 = vsub.s32 2, %v1947_v28 }
  0xac   : > { %3907 = vmatpush1.msk.msra.mxu1 %vm417_vm1, %v912_v38 }
  0xad   : > { %v1068_v40 = vpop.permute.xlu1 %1067  ;;  %v1072_v41 = vpop.permute.xlu0 %1071  ;;  %3908 = vmatmul.mubr.msk.f32.vlgmr.msra.gmra.mrb[0].mxu1 %vm413_vm2, %v3902_v39 }
  0xae   : > { %v1079_v42 = vsel %vm1077_vm5, %v1070_v35, %v1072_v41  ;;  %1228 = vmatprep.mubr.f32.mxu1 %v4238_v0  ;;  %v1078_v43 = vsel %vm1077_vm5, %v1068_v40, %v1070_v35 }
  0xaf   : > { %3909 = vmatprep.subr.msk.mxu0 %vm417_vm1, %v1079_v42 }
  0xb1   : > { %v1076_v44 = vpop.permute.xlu1 %1075  ;;  %3905 = vmatmul.mubr.msk.f32.vlgmr.msra.gmra.mrb[0].mxu0 %vm413_vm2, %v3902_v39  ;;  %v1074_v45 = vpop.permute.xlu0 %1073  ;;  %v1953_v39 = vrot.slane %v388_v30, %v4604_v32 }
  0xb2   : > { %3910 = vmatpush1.msk.msra.mxu0 %vm417_vm1, %v1078_v43  ;;  %v1080_v46 = vsel %vm1077_vm5, %v1072_v41, %v1074_v45  ;;  %v1081_v47 = vsel %vm1077_vm5, %v1074_v45, %v1076_v44  ;;  %1157 = vmatprep.mubr.f32.mxu0 %v4238_v0  ;;  %v1957_v45 = vrot.slane %v388_v30, %v4607_v37 }
  0xb3   : > { %3912 = vmatprep.subr.msk.mxu1 %vm417_vm1, %v1081_v47 }
  0xb4   : > { %3913 = vmatpush1.msk.msra.mxu1 %vm417_vm1, %v1080_v46 }
  0xb5   : > { %v1242_v49 = vpop.permute.xlu1 %1241  ;;  %v1240_v50 = vpop.permute.xlu0 %1239  ;;  %3914 = vmatmul.mubr.msk.f32.vlgmr.msra.gmra.mrb[0].mxu1 %vm413_vm2, %v3901_v48 }
  0xb6   : > { %v1249_v51 = vsel %vm1247_vm6, %v1240_v50, %v1242_v49  ;;  %1398 = vmatprep.mubr.f32.mxu1 %v4238_v0 }
  0xb7   : > { %3916 = vmatprep.subr.msk.mxu0 %vm417_vm1, %v1249_v51  ;;  %v1960_v51 = vsub.s32 3, %v1947_v28 }
  0xb9   : > { %v1244_v52 = vpop.permute.xlu1 %1243  ;;  %3911 = vmatmul.mubr.msk.f32.vlgmr.msra.gmra.mrb[0].mxu0 %vm413_vm2, %v3901_v48  ;;  %v1238_v53 = vpop.permute.xlu0 %1237 }
  0xba   : > { %v1248_v54 = vsel %vm1247_vm6, %v1238_v53, %v1240_v50  ;;  %1327 = vmatprep.mubr.f32.mxu0 %v4238_v0  ;;  %v1250_v59 = vsel %vm1247_vm6, %v1242_v49, %v1244_v52  ;;  %v1961_v53 = vrot.slane %v388_v30, %v1960_v51 }
  0xbb   : > { %3917 = vmatpush1.msk.msra.mxu0 %vm417_vm1, %v1248_v54 }
  0xbd   : > { %v1416_v55 = vpop.permute.xlu1 %1415  ;;  %v1246_v56 = vpop.permute.xlu0 %1245 }
  0xbe   : > { %v1251_v57 = vsel %vm1247_vm6, %v1244_v52, %v1246_v56 }
  0xbf   : > { %3919 = vmatprep.subr.msk.mxu1 %vm417_vm1, %v1251_v57 }
  0xc0   : > { %3920 = vmatpush1.msk.msra.mxu1 %vm417_vm1, %v1250_v59 }
  0xc1   : > { %v1414_v60 = vpop.permute.xlu1 %1413  ;;  %3918 = vmatmul.mubr.msk.f32.vlgmr.msra.gmra.mrb[0].mxu0 %vm413_vm2, %v3915_v58  ;;  %v1418_v61 = vpop.permute.xlu0 %1417  ;;  %3921 = vmatmul.mubr.msk.f32.vlgmr.msra.gmra.mrb[0].mxu1 %vm413_vm2, %v3915_v58 }
  0xc2   : > { %v1424_v62 = vsel %vm1423_vm7, %v1414_v60, %v1416_v55  ;;  %v1425_v63 = vsel %vm1423_vm7, %v1416_v55, %v1418_v61  ;;  %1503 = vmatprep.mubr.f32.mxu0 %v4238_v0  ;;  %1574 = vmatprep.mubr.f32.mxu1 %v4238_v0  ;;  %v3415_v55 = vld [vmem:[%s4876_s6] sm:$0xff] }
  0xc3   : > { %3924 = vmatprep.subr.msk.mxu0 %vm417_vm1, %v1425_v63 }
  0xc4   : > { %3925 = vmatpush1.msk.msra.mxu0 %vm417_vm1, %v1424_v62 }
  0xc5   : > { %v1422_v1 = vpop.permute.xlu1 %1421  ;;  %v1420_v2 = vpop.permute.xlu0 %1419 }
  0xc6   : > { %v1426_v3 = vsel %vm1423_vm7, %v1418_v61, %v1420_v2  ;;  %v1427_v4 = vsel %vm1423_vm7, %v1420_v2, %v1422_v1  ;;  %v3943_v61 = vld [vmem:[%s4875_s5 + $0x8] sm:$0xff] }
  0xc7   : > { %3927 = vmatprep.subr.msk.mxu1 %vm417_vm1, %v1427_v4 }
  0xc8   : > { %3928 = vmatpush1.msk.msra.mxu1 %vm417_vm1, %v1426_v3 }
  0xc9   : > { %v1586_v7 = vpop.permute.xlu1 %1585  ;;  %3926 = vmatmul.mubr.msk.f32.vlgmr.msra.gmra.mrb[0].mxu0 %vm413_vm2, %v3923_v5  ;;  %v1584_v8 = vpop.permute.xlu0 %1583  ;;  %3929 = vmatmul.mubr.msk.f32.vlgmr.msra.gmra.mrb[0].mxu1 %vm413_vm2, %v3923_v5  ;;  %v1970_v5 = vld [vmem:[%s4875_s5] sm:$0xff] }
  0xca   : > { %v1593_v9 = vsel %vm1591_vm8, %v1584_v8, %v1586_v7  ;;  %1671 = vmatprep.mubr.f32.mxu0 %v4238_v0  ;;  %1742 = vmatprep.mubr.f32.mxu1 %v4238_v0 }
  0xcb   : > { %3930 = vmatprep.subr.msk.mxu0 %vm417_vm1, %v1593_v9 }
  0xcd   : > { %v1588_v10 = vpop.permute.xlu1 %1587  ;;  %v1582_v11 = vpop.permute.xlu0 %1581 }
  0xce   : > { %v1592_v12 = vsel %vm1591_vm8, %v1582_v11, %v1584_v8  ;;  %v1594_v17 = vsel %vm1591_vm8, %v1586_v7, %v1588_v10 }
  0xcf   : > { %3931 = vmatpush1.msk.msra.mxu0 %vm417_vm1, %v1592_v12 }
  0xd1   : > { %v1754_v14 = vpop.permute.xlu1 %1753  ;;  %3932 = vmatmul.mubr.msk.f32.vlgmr.msra.gmra.mrb[0].mxu0 %vm413_vm2, %v3922_v13  ;;  %v1590_v15 = vpop.permute.xlu0 %1589 }
  0xd2   : > { %v1595_v16 = vsel %vm1591_vm8, %v1588_v10, %v1590_v15  ;;  %1841 = vmatprep.mubr.f32.mxu0 %v4238_v0 }
  0xd3   : > { %3933 = vmatprep.subr.msk.mxu1 %vm417_vm1, %v1595_v16 }
  0xd4   : > { %3934 = vmatpush1.msk.msra.mxu1 %vm417_vm1, %v1594_v17 }
  0xd5   : > { %v1752_v18 = vpop.permute.xlu1 %1751  ;;  %3935 = vmatmul.mubr.msk.f32.vlgmr.msra.gmra.mrb[0].mxu1 %vm413_vm2, %v3922_v13  ;;  %v1756_v19 = vpop.permute.xlu0 %1755  ;;  %v3948_v13 = vld [vmem:[%s4875_s5 + $0x10] sm:$0xff] }
  0xd6   : > { %v4574_v20 = vsel %vm1761_vm9, %v1752_v18, %v1754_v14  ;;  %v4577_v21 = vsel %vm1761_vm9, %v1754_v14, %v1756_v19  ;;  %1912 = vmatprep.mubr.f32.mxu1 %v4238_v0 }
  0xd7   : > { %3937 = vmatprep.subr.msk.mxu0 %vm417_vm1, %v4577_v21 }
  0xd8   : > { %3938 = vmatpush1.msk.msra.mxu0 %vm417_vm1, %v4574_v20 }
  0xd9   : > { %v1760_v23 = vpop.permute.xlu1 %1759  ;;  %3939 = vmatmul.mubr.msk.f32.vlgmr.msra.gmra.mrb[0].mxu0 %vm413_vm2, %v3936_v22  ;;  %v1758_v24 = vpop.permute.xlu0 %1757 }
  0xda   : > { %v4589_v25 = vsel %vm1761_vm9, %v1756_v19, %v1758_v24  ;;  %v1765_v26 = vsel %vm1761_vm9, %v1758_v24, %v1760_v23  ;;  %2059 = vmatprep.mubr.f32.mxu0 %v4238_v0  ;;  %v3952_v23 = vld [vmem:[%s4875_s5 + $0x20] sm:$0xff] }
  0xdb   : > { %3940 = vmatprep.subr.msk.mxu1 %vm417_vm1, %v1765_v26 }
  0xdc   : > { %3941 = vmatpush1.msk.msra.mxu1 %vm417_vm1, %v4589_v25 }
  0xdd   : > { %3942 = vmatmul.mubr.msk.f32.vlgmr.msra.gmra.mrb[0].mxu1 %vm413_vm2, %v3936_v22  ;;  %4005 = vmatprep.subr.mxu1 %v4238_v0 }
  0xde   : > { %4007 = vmatprep.mubr.msk.f32.mxu1 %vm4248_vm10, %v4238_v0 }
  0xea   : > { %v1935_v31 = vpop.permute.xlu0 %1934 }
 0x1ac   : > { %v1843_v33 = vpop.f32.mrb[0].mxu0 }
 0x1ad   : > { %v1937_v35 = vadd.f32 %v1935_v31, %v1843_v33  ;;  %v1845_v36 = vpop.f32.mrb[1].mxu0 }
 0x1ae   : > { %v1938_v38 = vadd.f32 %v1935_v31, %v1845_v36 }
 0x1af   : > { %v1941_v40 = vmax.f32 %v1937_v35, 0.0  ;;  %v3951_v35 = vld [vmem:[%s4875_s5 + $0x18] sm:$0xff] }
 0x1b0   : > { %v1942_v41 = vmax.f32 %v1938_v38, 0.0  ;;  %v1914_v42 = vpop.f32.mrb[0].mxu1 }
 0x1b1   : > { %v1966_v43 = vmul.f32 %v1949_v34, %v1941_v40  ;;  %v1939_v44 = vadd.f32 %v1935_v31, %v1914_v42  ;;  %v1916_v46 = vpop.f32.mrb[1].mxu1 }
 0x1b2   : > { %v1967_v47 = vmul.f32 %v1953_v39, %v1942_v41  ;;  %v1940_v50 = vadd.f32 %v1935_v31, %v1916_v46 }
 0x1b3   : > { %v1943_v48 = vmax.f32 %v1939_v44, 0.0  ;;  %1977 = vrot.lane.b32.xlu0 %v1966_v43, %s4239_s15 }
 0x1b4   : > { %1979 = vrot.lane.b32.xlu1 %v1967_v47, %s4239_s15  ;;  %v1944_v52 = vmax.f32 %v1940_v50, 0.0 }
 0x1b5   : > { %v4613_v49 = vmul.f32 %v1957_v45, %v1943_v48  ;;  %v3957_v45 = vld [vmem:[%s4875_s5 + $0x28] sm:$0xff] }
 0x1b6   : > { %v1969_v54 = vmul.f32 %v1961_v53, %v1944_v52  ;;  %v3961_v52 = vld [vmem:[%s4875_s5 + $0x38] sm:$0xff] }
 0x1b7   : > { %2286 = vrot.lane.b32.xlu0 %v4613_v49, %s4240_s16 }
 0x1b8   : > { %1981 = vrot.lane.b32.xlu1 %v4613_v49, %s4239_s15 }
 0x1bb   : > { %2447 = vrot.lane.b32.xlu0 %v1966_v43, %s4241_s22 }
 0x1bc   : > { %2282 = vrot.lane.b32.xlu1 %v1966_v43, %s4240_s16 }
 0x1bf   : > { %2605 = vrot.lane.b32.xlu0 %v1966_v43, %s4242_s24 }
 0x1c0   : > { %2284 = vrot.lane.b32.xlu1 %v1967_v47, %s4240_s16 }
 0x1c3   : > { %2449 = vrot.lane.b32.xlu0 %v1967_v47, %s4241_s22 }
 0x1c4   : > { %2451 = vrot.lane.b32.xlu1 %v4613_v49, %s4241_s22 }
 0x1c7   : > { %2765 = vrot.lane.b32.xlu0 %v1966_v43, %s4243_s25 }
 0x1c8   : > { %2609 = vrot.lane.b32.xlu1 %v4613_v49, %s4242_s24 }
 0x1cb   : > { %2607 = vrot.lane.b32.xlu0 %v1967_v47, %s4242_s24 }
 0x1cc   : > { %2769 = vrot.lane.b32.xlu1 %v4613_v49, %s4243_s25 }
 0x1cf   : > { %2934 = vrot.lane.b32.xlu0 %v4613_v49, %s4888_s13 }
 0x1d0   : > { %1983 = vrot.lane.b32.xlu1 %v1969_v54, %s4239_s15  ;;  %s377_s15 = sand.u32 1, %s4228_s18  }
 0x1d3   : > { %2767 = vrot.lane.b32.xlu0 %v1967_v47, %s4243_s25 }
 0x1d4   : > { %2930 = vrot.lane.b32.xlu1 %v1966_v43, %s4888_s13 }
 0x1d7   : > { %2611 = vrot.lane.b32.xlu0 %v1969_v54, %s4242_s24 }
 0x1d8   : > { %2288 = vrot.lane.b32.xlu1 %v1969_v54, %s4240_s16  ;;  %s4113_s16 = smul.u32 24, %s377_s15 }
 0x1da   : > { %s379_s24 = scalar_lea.vmem [#allocation2], %s4113_s16 }
 0x1db   : > { %3088 = vrot.lane.b32.xlu0 %v1966_v43, %s4889_s14 }
 0x1dc   : > { %2453 = vrot.lane.b32.xlu1 %v1969_v54, %s4241_s22  ;;  %s4115_s22 = smul.u32 384, %s4331_s21  ;;  %s3803_s21 = scalar_lea.sflag [#allocation3], %s377_s15 }
 0x1de   : > { %s4828_s30 = scalar_lea.hbm %s4881_s11, %s4115_s22 }
 0x1df   : > { %2771 = vrot.lane.b32.xlu0 %v1969_v54, %s4243_s25  ;;  %s3817_s25 = sshll.u32 %s379_s24, 4  ;;  %s4830_s25 = int_to_ptr.vmem [resolvable:$true] %s3817_s25 }
 0x1e0   : > { %2932 = vrot.lane.b32.xlu1 %v1967_v47, %s4888_s13 }
 0x1e3   : > { %3090 = vrot.lane.b32.xlu0 %v1967_v47, %s4889_s14 }
 0x1e4   : > { %3092 = vrot.lane.b32.xlu1 %v4613_v49, %s4889_s14 }
 0x1e7   : > { %3250 = vrot.lane.b32.xlu0 %v1967_v47, %s4247_s12 }
 0x1e8   : > { %2936 = vrot.lane.b32.xlu1 %v1969_v54, %s4888_s13  ;;  %s4174_s13 = scalar_lea.vmem %s4830_s25, 384 }
 0x1e9   : > { %p4175_p11 = scmp.ne.s32.totalorder %s4830_s25, %s4174_s13 }
 0x1eb   : > { %3254 = vrot.lane.b32.xlu0 %v1969_v54, %s4247_s12  ;;  %p4176_p12 = pnand %p4175_p11, %p4348_p5 }
 0x1ec   : > { %3094 = vrot.lane.b32.xlu1 %v1969_v54, %s4889_s14  ;;  %s4249_s14 = smov [#allocation2]  }
 0x1ed   : > { %p4177_p13 = pneg %p4176_p12  ;;  %s4178_s16 = sshll.u32 %s4249_s14, 4  ;;  %s4179_s16 = int_to_ptr.vmem [resolvable:$false] %s4178_s16 }
 0x1ee   : > { %p4181_p0 = scmp.lt.s32.totalorder %s4830_s25, %s4179_s16 }
 0x1ef   : > { %3418 = vperm.xlu0 %4166, %v3415_v55  }
 0x1f0   : > { %3252 = vrot.lane.b32.xlu1 %v4613_v49, %s4247_s12 }
 0x1f4   : > { %3248 = vrot.lane.b32.xlu1 %v1966_v43, %s4247_s12  ;;  %s4180_s12 = scalar_lea.vmem %s4179_s16, 768 }
 0x1f5   : > { %p4182_p1 = scmp.lt.s32.totalorder %s4180_s12, %s4174_s13 }
 0x1f7   : > { %p4183_p2 = por %p4182_p1, %p4181_p0 }
 0x1f9   : > { %p4184_p3 = pnand %p4183_p2, %p4177_p13 }
 0x225   : > { %v1978_v56 = vpop.permute.xlu0 %1977 }
 0x226   : > { %v1980_v57 = vpop.permute.xlu1 %1979 }
 0x227   : > { %v1985_v62 = vsel %vm408_vm0, %v1978_v56, %v1980_v57 }
 0x229   : > { %v2287_v58 = vpop.permute.xlu0 %2286 }
 0x22a   : > { %v1982_v59 = vpop.permute.xlu1 %1981 }
 0x22b   : > { %v1986_v60 = vsel %vm408_vm0, %v1980_v57, %v1982_v59  ;;  %v3960_v57 = vld [vmem:[%s4875_s5 + $0x30] sm:$0xff] }
 0x22c   : > { %1995 = vmatprep.subr.mxu0 %v1986_v60 }
 0x22d   : > { %1996 = vmatpush1.msra.mxu0 %v1985_v62  ;;  %v2448_v63 = vpop.permute.xlu0 %2447 }
 0x22e   : > { %v2283_v1 = vpop.permute.xlu1 %2282  ;;  %3944 = vmatmul.mubr.msk.f32.vlgmr.msra.gmra.mrb[2].mxu0 %vm1991_vm11, %v3943_v61  ;;  %2139 = vmatprep.subr.mxu0 %v1967_v47 }
 0x22f   : > { %2140 = vmatpush1.msra.mxu0 %v1966_v43  ;;  %2203 = vmatprep.mubr.f32.mxu0 %v4238_v0 }
 0x231   : > { %v2606_v2 = vpop.permute.xlu0 %2605 }
 0x232   : > { %v2285_v3 = vpop.permute.xlu1 %2284 }
 0x233   : > { %v2291_v4 = vsel %vm733_vm3, %v2285_v3, %v2287_v58  ;;  %v2290_v8 = vsel %vm733_vm3, %v2283_v1, %v2285_v3 }
 0x234   : > { %2299 = vmatprep.subr.mxu0 %v2291_v4 }
 0x235   : > { %v2450_v7 = vpop.permute.xlu0 %2449 }
 0x236   : > { %v2452_v9 = vpop.permute.xlu1 %2451  ;;  %3946 = vmatmul.mubr.msk.f32.vlgmr.msra.gmra.mrb[2].mxu0 %vm1991_vm11, %v1970_v5  ;;  %v2455_v15 = vsel %vm909_vm4, %v2448_v63, %v2450_v7 }
 0x237   : > { %2300 = vmatpush1.msra.mxu0 %v2290_v8  ;;  %v2456_v10 = vsel %vm909_vm4, %v2450_v7, %v2452_v9  ;;  %2363 = vmatprep.mubr.f32.mxu0 %v4238_v0 }
 0x238   : > { %2464 = vmatprep.subr.mxu0 %v2456_v10 }
 0x239   : > { %v2766_v11 = vpop.permute.xlu0 %2765 }
 0x23a   : > { %v2610_v12 = vpop.permute.xlu1 %2609 }
 0x23d   : > { %v2608_v14 = vpop.permute.xlu0 %2607 }
 0x23e   : > { %v2770_v16 = vpop.permute.xlu1 %2769  ;;  %3949 = vmatmul.mubr.msk.f32.vlgmr.msra.gmra.mrb[2].mxu0 %vm1991_vm11, %v3948_v13  ;;  %v2614_v17 = vsel %vm1077_vm5, %v2608_v14, %v2610_v12  ;;  %v2613_v26 = vsel %vm1077_vm5, %v2606_v2, %v2608_v14 }
 0x23f   : > { %2465 = vmatpush1.msra.mxu0 %v2455_v15  ;;  %2528 = vmatprep.mubr.f32.mxu0 %v4238_v0 }
 0x240   : > { %2622 = vmatprep.subr.mxu0 %v2614_v17 }
 0x241   : > { %v4680_v18 = vpop.permute.xlu0 %2934 }
 0x242   : > { %v1984_v19 = vpop.permute.xlu1 %1983 }
 0x243   : > { %v1987_v22 = vsel %vm408_vm0, %v1982_v59, %v1984_v19 }
 0x244   : > { %4006 = vmatpush3.msra.mxu1 %v1987_v22 }
 0x245   : > { %4008 = vmatmul.mubr.msk.f32.vlgmr.msra.gmra.mrb[2].mxu1 %vm1991_vm11, %v3943_v61  ;;  %4010 = vmatprep.subr.mxu1 %v4238_v0  ;;  %v2768_v24 = vpop.permute.xlu0 %2767  ;;  %v3966_v61 = vld [vmem:[%s4875_s5 + $0x40] sm:$0xff] }
 0x246   : > { %4011 = vmatpush3.msra.mxu1 %v4613_v49  ;;  %v2931_v28 = vpop.permute.xlu1 %2930  ;;  %3953 = vmatmul.mubr.msk.f32.vlgmr.msra.gmra.mrb[2].mxu0 %vm1991_vm11, %v3952_v23  ;;  %v2774_v30 = vsel %vm1247_vm6, %v2768_v24, %v2770_v16  ;;  %v2773_v38 = vsel %vm1247_vm6, %v2766_v11, %v2768_v24 }
 0x247   : > { %2623 = vmatpush1.msra.mxu0 %v2613_v26  ;;  %4012 = vmatprep.mubr.msk.f32.mxu1 %vm4248_vm10, %v4238_v0 }
 0x248   : > { %2782 = vmatprep.subr.mxu0 %v2774_v30  ;;  %4015 = vmatprep.subr.mxu1 %v4238_v0 }
 0x249   : > { %4013 = vmatmul.mubr.msk.f32.vlgmr.msra.gmra.mrb[4].mxu1 %vm1991_vm11, %v1970_v5  ;;  %v2612_v31 = vpop.permute.xlu0 %2611  ;;  %2686 = vmatprep.mubr.f32.mxu0 %v4238_v0 }
 0x24a   : > { %v2289_v33 = vpop.permute.xlu1 %2288  ;;  %4017 = vmatprep.mubr.msk.f32.mxu1 %vm4248_vm10, %v4238_v0  ;;  %v2615_v41 = vsel %vm1077_vm5, %v2610_v12, %v2612_v31  ;;  %v389_v31 = vld [vmem:[%s4872_s2] sm:$0x7] }
 0x24b   : > { %v2292_v34 = vsel %vm733_vm3, %v2287_v58, %v2289_v33  ;;  %vm3448_vm12 = vcmp.gt.f32.partialorder %v389_v31, 0.0  ;;  %vm3556_vm3 = vcmask 1041408  }
 0x24c   : > { %4016 = vmatpush3.msra.mxu1 %v2292_v34 }
 0x24d   : > { %4018 = vmatmul.mubr.msk.f32.vlgmr.msra.gmra.mrb[6].mxu1 %vm1991_vm11, %v3948_v13  ;;  %v3089_v36 = vpop.permute.xlu0 %3088  ;;  %4020 = vmatprep.subr.mxu1 %v4238_v0 }
 0x24e   : > { %v2454_v39 = vpop.permute.xlu1 %2453  ;;  %3955 = vmatmul.mubr.msk.f32.vlgmr.msra.gmra.mrb[2].mxu0 %vm1991_vm11, %v3951_v35  ;;  %4022 = vmatprep.mubr.msk.f32.mxu1 %vm4248_vm10, %v4238_v0 }
 0x24f   : > { %v2457_v40 = vsel %vm909_vm4, %v2452_v9, %v2454_v39  ;;  %2783 = vmatpush1.msra.mxu0 %v2773_v38  ;;  %2846 = vmatprep.mubr.f32.mxu0 %v4238_v0  ;;  %v3449_v38 = vsel %vm3448_vm12, 1, %v4246_v6  ;;  %vm3552_vm4 = vcmask 15360  }
 0x250   : > { %4021 = vmatpush3.msra.mxu1 %v2457_v40  ;;  %v3453_v39 = vrot.slane %v3449_v38, %v4599_v29  ;;  %v3457_v40 = vrot.slane %v3449_v38, %v4604_v32 }
 0x251   : > { %4023 = vmatmul.mubr.msk.f32.vlgmr.msra.gmra.mrb[8].mxu1 %vm1991_vm11, %v3952_v23  ;;  %4025 = vmatprep.subr.mxu1 %v4238_v0  ;;  %v2772_v42 = vpop.permute.xlu0 %2771 }
 0x252   : > { %v2933_v43 = vpop.permute.xlu1 %2932  ;;  %4026 = vmatpush3.msra.mxu1 %v2615_v41  ;;  %4027 = vmatprep.mubr.msk.f32.mxu1 %vm4248_vm10, %v4238_v0  ;;  %v2775_v46 = vsel %vm1247_vm6, %v2770_v16, %v2772_v42  ;;  %v3428_v41 = vrot.slane %v389_v31, %v4599_v29  ;;  %v3461_v42 = vrot.slane %v3449_v38, %v4607_v37  ;;  %vm3462_vm13 = vcmp.eq.s32.totalorder %v3453_v39, 1 }
 0x253   : > { %4030 = vmatprep.subr.mxu1 %v4238_v0  ;;  %v2939_v44 = vsel %vm1423_vm7, %v2933_v43, %v4680_v18  ;;  %v2938_v48 = vsel %vm1423_vm7, %v2931_v28, %v2933_v43  ;;  %vm3463_vm14 = vcmp.eq.s32.totalorder %v3457_v40, 1 }
 0x254   : > { %2947 = vmatprep.subr.mxu0 %v2939_v44  ;;  %vm3464_vm15 = vcmp.eq.s32.totalorder %v3461_v42, 1 }
 0x255   : > { %4028 = vmatmul.mubr.msk.f32.vlgmr.msra.gmra.mrb[10].mxu1 %vm1991_vm11, %v3951_v35  ;;  %v3091_v47 = vpop.permute.xlu0 %3090 }
 0x256   : > { %4031 = vmatpush3.msra.mxu1 %v2775_v46  ;;  %v3093_v49 = vpop.permute.xlu1 %3092  ;;  %3958 = vmatmul.mubr.msk.f32.vlgmr.msra.gmra.mrb[2].mxu0 %vm1991_vm11, %v3957_v45  ;;  %v3096_v55 = vsel %vm1591_vm8, %v3089_v36, %v3091_v47 }
 0x257   : > { %2948 = vmatpush1.msra.mxu0 %v2938_v48  ;;  %4032 = vmatprep.mubr.msk.f32.mxu1 %vm4248_vm10, %v4238_v0  ;;  %v3097_v50 = vsel %vm1591_vm8, %v3091_v47, %v3093_v49 }
 0x258   : > { %3105 = vmatprep.subr.mxu0 %v3097_v50  ;;  %4035 = vmatprep.subr.mxu1 %v4238_v0 }
 0x259   : > { %4033 = vmatmul.mubr.msk.f32.vlgmr.msra.gmra.mrb[12].mxu1 %vm1991_vm11, %v3957_v45  ;;  %3011 = vmatprep.mubr.f32.mxu0 %v4238_v0  ;;  %v3251_v54 = vpop.permute.xlu0 %3250  ;;  %v3432_v45 = vrot.slane %v389_v31, %v4604_v32 }
 0x25a   : > { %v2937_v51 = vpop.permute.xlu1 %2936  ;;  %4037 = vmatprep.mubr.msk.f32.mxu1 %vm4248_vm10, %v4238_v0 }
 0x25b   : > { %v2940_v53 = vsel %vm1423_vm7, %v4680_v18, %v2937_v51 }
 0x25c   : > { %4036 = vmatpush3.msra.mxu1 %v2940_v53 }
 0x25d   : > { %4038 = vmatmul.mubr.msk.f32.vlgmr.msra.gmra.mrb[14].mxu1 %vm1991_vm11, %v3961_v52  ;;  %4040 = vmatprep.subr.mxu1 %v4238_v0  ;;  %v3255_v59 = vpop.permute.xlu0 %3254 }
 0x25e   : > { %v3095_v56 = vpop.permute.xlu1 %3094  ;;  %3962 = vmatmul.mubr.msk.f32.vlgmr.msra.gmra.mrb[2].mxu0 %vm1991_vm11, %v3961_v52  ;;  %4042 = vmatprep.mubr.msk.f32.mxu1 %vm4248_vm10, %v4238_v0 }
 0x25f   : > { %v3098_v58 = vsel %vm1591_vm8, %v3093_v49, %v3095_v56  ;;  %3106 = vmatpush1.msra.mxu0 %v3096_v55  ;;  %3169 = vmatprep.mubr.f32.mxu0 %v4238_v0  ;;  %v3436_v49 = vrot.slane %v389_v31, %v4607_v37  ;;  %v3473_v37 = vand.u32 127, %v1946_v27  ;;  %v3639_v27 = vld [vmem:[%s4879_s9] sm:$0xff] }
 0x260   : > { %4041 = vmatpush3.msra.mxu1 %v3098_v58 }
 0x261   : > { %4043 = vmatmul.mubr.msk.f32.vlgmr.msra.gmra.mrb[16].mxu1 %vm1991_vm11, %v3960_v57  ;;  %4045 = vmatprep.subr.mxu1 %v4238_v0  ;;  %vm3474_vm0 = vcmp.eq.s32.totalorder %v3473_v37, 0 }
 0x262   : > { %v3253_v60 = vpop.permute.xlu1 %3252  ;;  %4047 = vmatprep.mubr.msk.f32.mxu1 %vm4248_vm10, %v4238_v0 }
 0x263   : > { %v3258_v62 = vsel %vm1761_vm9, %v3253_v60, %v3255_v59  ;;  %v3257_v63 = vsel %vm1761_vm9, %v3251_v54, %v3253_v60 }
 0x264   : > { %3265 = vmatprep.subr.mxu0 %v3257_v63  ;;  %4046 = vmatpush3.msra.mxu1 %v3258_v62 }
 0x265   : > { %4048 = vmatmul.mubr.msk.f32.vlgmr.msra.gmra.mrb[18].mxu1 %vm1991_vm11, %v3966_v61  ;;  %4055 = vmatprep.subr.mxu1 %v4238_v0 }
 0x266   : > { %v3249_v1 = vpop.permute.xlu1 %3248  ;;  %3964 = vmatmul.mubr.msk.f32.vlgmr.msra.gmra.mrb[2].mxu0 %vm1991_vm11, %v3960_v57  ;;  %4057 = vmatprep.mubr.msk.f32.mxu1 %vm4248_vm10, %v4238_v0 }
 0x267   : > { %v3256_v2 = vsel %vm1761_vm9, %v3249_v1, %v3251_v54  ;;  %3329 = vmatprep.mubr.f32.mxu0 %v4238_v0 }
 0x268   : > { %3266 = vmatpush1.msra.mxu0 %v3256_v2 }
 0x269   : > { %4050 = vmatprep.subr.mxu0 %v4238_v0 }
 0x26e   : > { %3967 = vmatmul.mubr.msk.f32.vlgmr.msra.gmra.mrb[2].mxu0 %vm1991_vm11, %v3966_v61  ;;  %v3419_v43 = vpop.permute.xlu0 %3418  ;;  %v3476_v61 = vld [vmem:[%s4877_s7] sm:$0x3] }
 0x26f   : > { %4052 = vmatprep.mubr.msk.f32.mxu0 %vm4248_vm10, %v4238_v0 }
 0x318   : > { %v2132_v3 = vpop.f32.mrb[2].mxu1 }
 0x319   : > { %v4009_v4 = vpop.f32.mrb[3].mxu1 }
 0x31c   : > { %v2276_v5 = vpop.f32.mrb[4].mxu1 }
 0x31d   : > { %v2277_v7 = vadd.f32 %v2276_v5, %v2132_v3  ;;  %v4014_v8 = vpop.f32.mrb[5].mxu1  ;;  %v3551_v3 = vld [vmem:[%s4878_s8] sm:$0xff] }
 0x320   : > { %v2436_v9 = vpop.f32.mrb[6].mxu1 }
 0x321   : > { %v2442_v10 = vadd.f32 %v2436_v9, %v2277_v7  ;;  %v4019_v11 = vpop.f32.mrb[7].mxu1 }
 0x324   : > { %v2601_v12 = vpop.f32.mrb[8].mxu1 }
 0x325   : > { %v4024_v13 = vpop.f32.mrb[9].mxu1 }
 0x328   : > { %v2759_v14 = vpop.f32.mrb[10].mxu1 }
 0x329   : > { %v2760_v15 = vadd.f32 %v2759_v14, %v2601_v12  ;;  %v4029_v16 = vpop.f32.mrb[11].mxu1 }
 0x32c   : > { %v2919_v17 = vpop.f32.mrb[12].mxu1 }
 0x32d   : > { %v2925_v18 = vadd.f32 %v2919_v17, %v2760_v15  ;;  %v4034_v19 = vpop.f32.mrb[13].mxu1 }
 0x32f   : > { %v3411_v22 = vadd.f32 %v2925_v18, %v2442_v10 }
 0x330   : > { %v3084_v23 = vpop.f32.mrb[14].mxu1 }
 0x331   : > { %v4039_v24 = vpop.f32.mrb[15].mxu1 }
 0x334   : > { %v3242_v26 = vpop.f32.mrb[16].mxu1 }
 0x335   : > { %v3243_v28 = vadd.f32 %v3242_v26, %v3084_v23  ;;  %v4044_v30 = vpop.f32.mrb[17].mxu1 }
 0x338   : > { %v3402_v33 = vpop.f32.mrb[18].mxu1 }
 0x339   : > { %v3408_v34 = vadd.f32 %v3402_v33, %v3243_v28  ;;  %v4049_v35 = vpop.f32.mrb[19].mxu1 }
 0x33b   : > { %v3414_v36 = vadd.f32 %v3411_v22, %v3408_v34 }
 0x33d   : > { %v4781_v48 = vadd.f32 %v3419_v43, %v3414_v36 }
 0x33f   : > { %v3467_v53 = vsel %vm3464_vm15, %v4781_v48, -inf  ;;  %v3442_v54 = vmul.f32 %v3436_v49, %v4781_v48 }
 0x341   : > { %v3331_v44 = vpop.f32.mrb[2].mxu0 }
 0x342   : > { %v4779_v46 = vadd.f32 %v3419_v43, %v3331_v44  ;;  %v3333_v47 = vpop.f32.mrb[3].mxu0 }
 0x343   : > { %v4783_v6 = vadd.f32 %v3419_v43, %v3333_v47 }
 0x344   : > { %v3440_v50 = vmul.f32 %v3428_v41, %v4779_v46  ;;  %v3465_v29 = vsel %vm3462_vm13, %v4779_v46, -inf }
 0x345   : > { %v3441_v51 = vmul.f32 %v3432_v45, %v4783_v6  ;;  %v3466_v32 = vsel %vm3463_vm14, %v4783_v6, -inf }
 0x346   : > { %v3468_v52 = vmax.f32 %v3465_v29, %v3466_v32 }
 0x347   : > { %v3443_v55 = vadd.f32 %v3441_v51, %v3440_v50 }
 0x348   : > { %v3469_v56 = vmax.f32 %v3468_v52, %v3467_v53 }
 0x349   : > { %v3444_v57 = vadd.f32 %v3443_v55, %v3442_v54 }
 0x34a   : > { %3470 = vmax.xlane.f32.xlu0 %v3469_v56 }
 0x34b   : > { %3445 = vadd.xlane.f32.xlu1 %v3444_v57 }
 0x3d7   : > { %v3471_v60 = vpop.xlane.xlu0 %3470 }
 0x3d8   : > { %v3446_v58 = vpop.xlane.xlu1 %3445 }
 0x3d9   : > { %v3447_v59 = vmul.f32 0.00390625, %v3446_v58 }
 0x3db   : > { %v3475_v62 = vsel %vm3474_vm0, %v3447_v59, %v3471_v60 }
 0x3dc   : > { %4051 = vmatpush3.msra.mxu0 %v3475_v62 }
 0x3dd   : > { %4053 = vmatmul.mubr.msk.f32.vlgmr.msra.gmra.mrb[4].mxu0 %vm1991_vm11, %v3476_v61  ;;  %3973 = vmatprep.subr.msk.mxu0 %vm417_vm1, %v4577_v21 }
 0x3de   : > { %3974 = vmatpush1.msk.msra.mxu0 %vm417_vm1, %v4574_v20  ;;  %3713 = vmatprep.mubr.f32.mxu0 %v4238_v0  ;;  %v3640_v20 = vld [vmem:[%s4880_s10] sm:$0xff] }
 0x3df   : > { %3643 = vperm.xlu1 %4167, %v3640_v20  }
 0x3e1   : > { %3975 = vmatmul.mubr.msk.f32.vlgmr.msra.gmra.mrb[6].mxu0 %vm413_vm2, %v3639_v27 }
 0x45e   : > { %v3644_v13 = vpop.permute.xlu1 %3643 }
 0x4b0   : > { %v3546_v63 = vpop.f32.mrb[4].mxu0 }
 0x4b1   : > { %v3550_v1 = vmax.f32 %v3546_v63, 0.0  ;;  %v4054_v2 = vpop.f32.mrb[5].mxu0 }
 0x4b3   : > { %4056 = vmatpush3.msk.msra.mxu1 %vm3556_vm3, %v3550_v1 }
 0x4b4   : > { %4058 = vmatmul.mubr.msk.f32.vlgmr.msra.gmra.mrb[20].mxu1 %vm3552_vm4, %v3551_v3  ;;  %4060 = vmatprep.subr.mxu1 %v4238_v0  ;;  %v3715_v21 = vpop.f32.mrb[6].mxu0 }
 0x4b5   : > { %4061 = vmatpush3.msk.msra.mxu1 %vm417_vm1, %v4589_v25  ;;  %4062 = vmatprep.mubr.msk.f32.mxu1 %vm4248_vm10, %v4238_v0  ;;  %v3717_v10 = vpop.f32.mrb[7].mxu0  ;;  %v3716_v14 = vadd.f32 %v3715_v21, %v3644_v13 }
 0x4b6   : > { %v3718_v15 = vadd.f32 %v3717_v10, %v3644_v13 }
 0x4b8   : > { %4063 = vmatmul.mubr.msk.f32.vlgmr.msra.gmra.mrb[22].mxu1 %vm413_vm2, %v3639_v27 }
 0x587   : > { %v3626_v4 = vpop.f32.mrb[20].mxu1 }
 0x588   : > { %v3972_v5 = vmul.f32 -1.442695, %v3626_v4  ;;  %v4059_v7 = vpop.f32.mrb[21].mxu1 }
 0x58a   : > { %4170 = vpow2.f32 %v3972_v5 }
 0x58b   : > { %v3786_v11 = vpop.f32.mrb[22].mxu1 }
 0x58c   : > { %v4064_v12 = vpop.f32.mrb[23].mxu1  ;;  %v3787_v16 = vadd.f32 %v3786_v11, %v3644_v13 }
 0x594   : > { %v4171_v8 = vpop.eup %4170 }
 0x595   : > { %v3633_v9 = vadd.f32 1.0, %v4171_v8 }
 0x597   : > { %4172 = vrcp.f32 %v3633_v9 }
 0x5a1   : > { %v4173_v25 = vpop.eup %4172 }
 0x5a2   : > { %v3636_v0 = vsel %vm3552_vm4, %v4173_v25, 0.0 }
 0x5a3   : > { %3637 = vadd.xlane.f32.xlu0 %v3636_v0 }
 0x630   : > { %v3638_v17 = vpop.xlane.xlu0 %3637 }
 0x631   : > { %v3790_v18 = vmul.f32 %v3638_v17, %v4779_v46  ;;  %v3791_v19 = vmul.f32 %v3638_v17, %v4783_v6  ;;  %v3792_v22 = vmul.f32 %v3638_v17, %v4781_v48 }
 0x633   : > { %v3793_v23 = vadd.f32 %v3790_v18, %v3716_v14  ;;  %v3794_v24 = vadd.f32 %v3791_v19, %v3718_v15  ;;  %v3795_v26 = vadd.f32 %v3792_v22, %v3787_v16 }
 0x635   : > { %v3796_v28 = vmax.f32 %v3793_v23, 0.0  ;;  %v3797_v30 = vmax.f32 %v3794_v24, 0.0  ;;  %v3798_v31 = vmax.f32 %v3795_v26, 0.0 }
 0x637   : > { %3799 = vst [vmem:[%s379_s24] sm:$0xff] %v3796_v28  ;;  %3800 = vst [vmem:[%s379_s24 + $0x8] sm:$0xff] %v3797_v30 }
 0x638   : > { %3801 = vst [vmem:[%s379_s24 + $0x10] sm:$0xff] %v3798_v31 }
 0x639   : > { %4187 = shalt.err (!%p4184_p3)
}
 0x63a   : > { %s4188_s15 = scalar_lea.hbm %s4828_s30, 384  ;;  %s4192_s29 = scalar_lea.hbm %s4881_s11, 768 }
 0x63b   : > { %p4189_p4 = scmp.ne.s32.totalorder %s4828_s30, %s4188_s15  ;;  %p4193_p9 = scmp.lt.u32.totalorder %s4828_s30, %s4881_s11 }
 0x63c   : > { %p4194_p10 = scmp.lt.u32.totalorder %s4192_s29, %s4188_s15  ;;  %p4196_p12 = scmp.lt.u32.totalorder %s4188_s15, %s4828_s30 }
 0x63d   : > { %p4190_p7 = pnand %p4189_p4, %p4348_p5 }
 0x63e   : > { %p4195_p11 = por %p4194_p10, %p4193_p9 }
 0x63f   : > { %p4191_p8 = pneg %p4190_p7 }
 0x640   : > { %p4197_p13 = por %p4196_p12, %p4195_p11 }
 0x642   : > { %p4198_p0 = pnand %p4197_p13, %p4191_p8 }
 0x644   : > { %4201 = shalt.err (!%p4198_p0)
}
 0x645   : > { %4116 = dma.vmem_to_hbm [thread:$0]  (%p4348_p5), %s4830_s25, 384, %s4828_s30, %s3803_s21  }
 0x646 PF: > { %p4122_p1 = scmp.ge.s32.totalorder %s4236_s20, 2  ;;  %s3829_s13 = sand.u32 1, %s4224_s17  }
 0x647   : > { %s3830_s12 = scalar_lea.sflag [#allocation3], %s3829_s13 }
 0x648   : > { %p4119_p2 = pnand %p4122_p1, %p4352_p6 }
 0x64a   : > { %4219 = dma.done.wait (!%p4119_p2), %s3830_s12, 384  }
 0x64b   : > { %4221 = vsyncadd (!%p4119_p2), %s3830_s12, 4294966912  ;;  %p21_p3 = scmp.ge.s32.totalorder %s4335_s23, 4   ;;  %s4890_s17 = smov %s4228_s18 }
 0x64c   : > { %s4891_s18 = smov %s4232_s19  ;;  %s4892_s19 = smov %s4346_s26 }
 0x64d   : > { %s4893_s20 = smov %s4335_s23  ;;  %23 = sbr.rel (!%p21_p3) target bundleno = 3 (0x3), region = 115 }
 0x654   :  { %3835 = vsyncpa [#allocation3], 1 }
 0x655   :  { %3837 = vsyncpa [#allocation3 + $0x1], 1 }

</bundles_post_ra>
